<compile_context>
chip_gen: v7x
topology: tpu7x:2x2x1
jax: 0.10.0
libtpu: 0.0.40
codegen_flags: <defaults>
</compile_context>

<pallas_src>
import functools
import math

import jax
import jax.numpy as jnp
from jax.experimental import pallas as pl
from jax.experimental.pallas import tpu as pltpu


_N_LAYERS = 8


def _round_up(n, m):
    return ((n + m - 1) // m) * m


def _act(name, x):
    if name == "relu":
        return jnp.maximum(x, 0.0)
    if name == "sigmoid":
        return jax.nn.sigmoid(x)
    if name == "ste":
        # STEFunction.forward: (input > 0).float()
        return (x > 0.0).astype(x.dtype)
    raise ValueError(f"unknown activation {name}")


def _lane_multiple():
    # v6e/v7x have a 2x256^2 MXU -> prefer 256-aligned K/N when the dim > 128.
    try:
        kind = jax.devices()[0].device_kind.lower()
    except Exception:
        return 128
    if "v6" in kind or "v7" in kind:
        return 256
    return 128


def _pad_dim(d, lane_mult):
    if d <= 128:
        return 128
    return _round_up(d, lane_mult)


def _vmem_capacity_bytes():
    try:
        cap = getattr(pltpu.get_tpu_info(), "vmem_capacity_bytes", None)
        if cap:
            return int(cap)
    except Exception:
        pass
    try:
        if "v7" in jax.devices()[0].device_kind.lower():
            return 64 * 1024 * 1024
    except Exception:
        pass
    return 128 * 1024 * 1024


def _pick_batch_tile(B, block_b):
    """Multiple-of-8 batch tile; prefers a tile that divides B (no batch padding)
    and guarantees >= 2 grid steps when B is large enough (v7x megacore)."""
    B8 = _round_up(max(B, 1), 8)
    max_tb = min(_round_up(block_b, 8), B8)
    if B8 >= 16:
        max_tb = min(max_tb, max(8, (B8 // 2) // 8 * 8))
    if B % 8 == 0:
        for cand in range(max_tb, 7, -8):
            if B % cand == 0:
                return cand
    return max_tb


def _mlp_chunk_kernel(activation, matmul_dtype, out_pad_dims, final_sigmoid,
                      fuse_flow, x_ref, *refs):
    """refs = (w_0..w_{n-1}, b_packed, o_0..o_{n-1}); weights are [pad_in, pad_out]."""
    n = len(out_pad_dims)
    w_refs = refs[:n]
    b_ref = refs[n]
    o_refs = refs[n + 1:]

    h = x_ref[...]
    if h.dtype != matmul_dtype:
        h = h.astype(matmul_dtype)

    for i in range(n):
        w = w_refs[i][...]                               # [pad_in, pad_out], matmul dtype
        b = b_ref[i:i + 1, :out_pad_dims[i]]             # [1, pad_out], f32 (static slice)
        z = jnp.dot(h, w, preferred_element_type=jnp.float32) + b   # f32 accumulate
        if final_sigmoid and i == n - 1:
            o_refs[i][...] = jax.nn.sigmoid(z).astype(o_refs[i].dtype)
        else:
            a = _act(activation, z)                      # activation computed in f32
            if fuse_flow:
                hn = a.astype(o_refs[i].dtype)           # single cast: store + next matmul
                o_refs[i][...] = hn
                h = hn
            else:
                o_refs[i][...] = a.astype(o_refs[i].dtype)
                h = a.astype(matmul_dtype)


def _run_chunk(x_pad, w_pads, b_packed, out_pad_dims, out_dtypes, *, activation,
               matmul_dtype, final_sigmoid, fuse_flow, TB, nb, vmem_limit,
               single_buffer_const):
    n = len(w_pads)
    B_pad, in0 = x_pad.shape
    const_kw = {"pipeline_mode": pl.Buffered(1)} if single_buffer_const else {}

    kernel = functools.partial(_mlp_chunk_kernel, activation, matmul_dtype,
                               tuple(out_pad_dims), final_sigmoid, fuse_flow)

    in_specs = (
        [pl.BlockSpec((TB, in0), lambda i: (i, 0))]
        + [pl.BlockSpec(w.shape, lambda i: (0, 0), **const_kw) for w in w_pads]
        + [pl.BlockSpec(b_packed.shape, lambda i: (0, 0), **const_kw)]
    )
    out_specs = tuple(pl.BlockSpec((TB, out_pad_dims[j]), lambda i: (i, 0))
                      for j in range(n))
    out_shapes = tuple(jax.ShapeDtypeStruct((B_pad, out_pad_dims[j]), out_dtypes[j])
                       for j in range(n))

    outs = pl.pallas_call(
        kernel,
        out_shape=out_shapes,
        grid=(nb,),
        in_specs=in_specs,
        out_specs=out_specs,
        compiler_params=pltpu.CompilerParams(
            dimension_semantics=("parallel",),     # megacore split of the batch on v7x
            vmem_limit_bytes=vmem_limit,
        ),
    )(x_pad, *w_pads, b_packed)
    if not isinstance(outs, (list, tuple)):
        outs = (outs,)
    return list(outs)


def mlp8_forward(x, weights, biases, activation="relu", block_b=512,
                 matmul_dtype=jnp.bfloat16, store_dtype=jnp.bfloat16,
                 final_dtype=jnp.float32, force_layers_per_chunk=None):
    """Fused 8-layer MLP. Returns the `op` list: [x, h1, ..., h7, sigmoid(lin8(h7))]."""
    assert len(weights) == _N_LAYERS and len(biases) == _N_LAYERS
    B, d_in0 = x.shape
    in_dims = [w.shape[1] for w in weights]
    out_dims = [w.shape[0] for w in weights]
    assert in_dims[0] == d_in0
    for i in range(_N_LAYERS - 1):
        assert out_dims[i] == in_dims[i + 1]

    lane = _lane_multiple()
    pad_in = [_pad_dim(d, lane) for d in in_dims]
    pad_out = [_pad_dim(d, lane) for d in out_dims]
    for i in range(_N_LAYERS - 1):
        assert pad_out[i] == pad_in[i + 1]

    TB = _pick_batch_tile(B, block_b)
    B_pad = _round_up(B, TB)
    nb = B_pad // TB

    w_itemsize = jnp.dtype(matmul_dtype).itemsize
    store_dtypes = [store_dtype] * (_N_LAYERS - 1) + [final_dtype]
    fuse_flow = jnp.dtype(store_dtype) == jnp.dtype(matmul_dtype)

    # --- host-side padding; x pre-cast to the matmul dtype (halves x DMA for bf16)
    x_pad = jnp.zeros((B_pad, pad_in[0]), matmul_dtype).at[:B, :d_in0].set(
        x.astype(matmul_dtype))

    wt_pad = []   # pre-transposed to [in, out]; zero padding keeps padded lanes clean
    for i, w in enumerate(weights):
        wt = jnp.zeros((pad_in[i], pad_out[i]), matmul_dtype)
        wt_pad.append(wt.at[:in_dims[i], :out_dims[i]].set(w.T.astype(matmul_dtype)))

    # --- layer chunking: keep all weights resident only if they comfortably fit VMEM
    vmem_cap = _vmem_capacity_bytes()
    if force_layers_per_chunk is not None:
        chunks, s = [], 0
        while s < _N_LAYERS:
            chunks.append(list(range(s, min(s + force_layers_per_chunk, _N_LAYERS))))
            s += force_layers_per_chunk
    else:
        weight_budget = int(0.45 * vmem_cap)   # resident weights, double-buffer worst case
        chunks, cur, cur_bytes = [], [], 0
        for i in range(_N_LAYERS):
            wb = pad_in[i] * pad_out[i] * w_itemsize * 2
            if cur and cur_bytes + wb > weight_budget:
                chunks.append(cur)
                cur, cur_bytes = [], 0
            cur.append(i)
            cur_bytes += wb
        chunks.append(cur)

    use_single_buf = hasattr(pl, "Buffered")

    outs_all = []
    x_cur = x_pad
    for ci, layer_ids in enumerate(chunks):
        is_last_chunk = (ci == len(chunks) - 1)
        c_pad_in = [pad_in[i] for i in layer_ids]
        c_pad_out = [pad_out[i] for i in layer_ids]
        c_out_dtypes = [store_dtypes[i] for i in layer_ids]
        max_po = max(c_pad_out)

        b_packed = jnp.zeros((len(layer_ids), max_po), jnp.float32)
        for r, i in enumerate(layer_ids):
            b_packed = b_packed.at[r, :out_dims[i]].set(biases[i].astype(jnp.float32))

        # footprint-derived VMEM ceiling, clamped under the chip's capacity
        w_bytes = sum(pi * po for pi, po in zip(c_pad_in, c_pad_out)) * w_itemsize * 2
        b_bytes = b_packed.size * 4 * 2
        x_bytes = 2 * TB * c_pad_in[0] * jnp.dtype(x_cur.dtype).itemsize
        o_bytes = 2 * sum(TB * po * jnp.dtype(dt).itemsize
                          for po, dt in zip(c_pad_out, c_out_dtypes))
        tmp_bytes = 4 * TB * max(max(c_pad_in), max_po) * 4
        limit = w_bytes + b_bytes + x_bytes + o_bytes + tmp_bytes + 8 * 1024 * 1024
        limit = int(min(max(limit, 32 * 1024 * 1024), int(vmem_cap * 0.9)))

        run = functools.partial(
            _run_chunk, x_cur, [wt_pad[i] for i in layer_ids], b_packed,
            c_pad_out, c_out_dtypes, activation=activation,
            matmul_dtype=matmul_dtype, final_sigmoid=is_last_chunk,
            fuse_flow=fuse_flow, TB=TB, nb=nb, vmem_limit=limit)
        if use_single_buf:
            try:
                outs = run(single_buffer_const=True)
            except Exception:
                outs = run(single_buffer_const=False)
        else:
            outs = run(single_buffer_const=False)

        outs_all.extend(outs)
        x_cur = outs[-1]          # padded activation is the next chunk's input

    # --- assemble op list; slice only where padding actually happened ---
    op = [x]
    for i, o in enumerate(outs_all):
        if B_pad != B or pad_out[i] != out_dims[i]:
            o = o[:B, :out_dims[i]]
        op.append(o)
    return op


def reference_forward(x, weights, biases, activation):
    def act(z):
        if activation == "relu":
            return jnp.maximum(z, 0.0)
        if activation == "sigmoid":
            return jax.nn.sigmoid(z)
        if activation == "ste":
            return (z > 0.0).astype(z.dtype)
        raise ValueError(activation)

    op = [x]
    h = x
    for i in range(_N_LAYERS - 1):
        h = act(h @ weights[i].T + biases[i])
        op.append(h)
    op.append(jax.nn.sigmoid(h @ weights[_N_LAYERS - 1].T + biases[_N_LAYERS - 1]))
    return op


def init_params(arch, key):
    """Deterministic kaiming_normal_ (fan_in, gain=sqrt(2)) weights, zero biases."""
    dims = [(arch[i], arch[i + 1]) for i in range(7)]   # lin1..lin7
    dims.append((arch[7], arch[-1]))                     # lin8: width -> output_dim
    weights, biases = [], []
    for d_in, d_out in dims:
        key, sub = jax.random.split(key)
        std = math.sqrt(2.0 / d_in)
        weights.append(std * jax.random.normal(sub, (d_out, d_in), dtype=jnp.float32))
        biases.append(jnp.zeros((d_out,), dtype=jnp.float32))
    return weights, biases


def _check_exact(op, ref_op, tol):
    assert len(op) == len(ref_op)
    for a, b in zip(op, ref_op):
        assert a.shape == b.shape, (a.shape, b.shape)
        err = float(jnp.max(jnp.abs(a.astype(jnp.float32) - b)))
        assert err < tol, err


if __name__ == "__main__":
    key = jax.random.PRNGKey(0)

    # --- small shapes consistent with mlp8 (arch has 8 entries; arch[-1] = output dim)
    arch = [16, 32, 32, 32, 32, 32, 32, 8]
    batch = 4
    key, xkey, pkey = jax.random.split(key, 3)
    x = jax.random.normal(xkey, (batch, arch[0]), dtype=jnp.float32)
    weights, biases = init_params(arch, pkey)

    # exact path: f32 matmuls + f32 stores, relu
    op = mlp8_forward(x, weights, biases, activation="relu",
                      matmul_dtype=jnp.float32, store_dtype=jnp.float32)
    op = [jax.block_until_ready(o) for o in op]
    _check_exact(op, reference_forward(x, weights, biases, "relu"), 1e-5)

    # exact path, STE activation
    op_ste = mlp8_forward(x, weights, biases, activation="ste",
                          matmul_dtype=jnp.float32, store_dtype=jnp.float32)
    op_ste = [jax.block_until_ready(o) for o in op_ste]
    _check_exact(op_ste, reference_forward(x, weights, biases, "ste"), 1e-5)

    # exercise the layer-chunking (weight-streaming) fallback path, exact dtype
    op_chunk = mlp8_forward(x, weights, biases, activation="relu",
                            matmul_dtype=jnp.float32, store_dtype=jnp.float32,
                            force_layers_per_chunk=3)
    op_chunk = [jax.block_until_ready(o) for o in op_chunk]
    _check_exact(op_chunk, reference_forward(x, weights, biases, "relu"), 1e-5)

    # --- larger run exercising the batch grid + the default bf16 fast path
    arch2 = [256, 256, 256, 256, 256, 256, 256, 64]
    batch2 = 256
    key, xkey2, pkey2 = jax.random.split(key, 3)
    x2 = jax.random.normal(xkey2, (batch2, arch2[0]), dtype=jnp.float32)
    weights2, biases2 = init_params(arch2, pkey2)

    op2 = mlp8_forward(x2, weights2, biases2, activation="relu")  # bf16 defaults
    op2 = [jax.block_until_ready(o) for o in op2]
    ref2 = reference_forward(x2, weights2, biases2, "relu")
    for a, b in zip(op2, ref2):
        assert a.shape == b.shape, (a.shape, b.shape)
        scale = float(jnp.max(jnp.abs(b))) + 1.0
        err = float(jnp.max(jnp.abs(a.astype(jnp.float32) - b)))
        assert err < 5e-2 * scale, (err, scale)

    print("KERNEL_OK")
</pallas_src>

<mosaic_0001>
module attributes {stable_mosaic.version = 11 : i64} {
  func.func @_mlp_chunk_kernel(%arg0: i32, %arg1: memref<8x128xf32, #tpu.memory_space<vmem>>, %arg2: memref<128x128xf32, #tpu.memory_space<vmem>>, %arg3: memref<128x128xf32, #tpu.memory_space<vmem>>, %arg4: memref<128x128xf32, #tpu.memory_space<vmem>>, %arg5: memref<128x128xf32, #tpu.memory_space<vmem>>, %arg6: memref<128x128xf32, #tpu.memory_space<vmem>>, %arg7: memref<128x128xf32, #tpu.memory_space<vmem>>, %arg8: memref<128x128xf32, #tpu.memory_space<vmem>>, %arg9: memref<128x128xf32, #tpu.memory_space<vmem>>, %arg10: memref<8x128xf32, #tpu.memory_space<vmem>>, %arg11: memref<8x128xf32, #tpu.memory_space<vmem>>, %arg12: memref<8x128xf32, #tpu.memory_space<vmem>>, %arg13: memref<8x128xf32, #tpu.memory_space<vmem>>, %arg14: memref<8x128xf32, #tpu.memory_space<vmem>>, %arg15: memref<8x128xf32, #tpu.memory_space<vmem>>, %arg16: memref<8x128xf32, #tpu.memory_space<vmem>>, %arg17: memref<8x128xf32, #tpu.memory_space<vmem>>, %arg18: memref<8x128xf32, #tpu.memory_space<vmem>>) attributes {dimension_semantics = [#tpu.dimension_semantics<parallel>], iteration_bounds = array<i64: 1>, scalar_prefetch = 0 : i64, scratch_operands = 0 : i64, tpu.core_type = #tpu.core_type<tc>, window_params = [{transform_indices = @transform_0, window_bounds = array<i64: 8, 128>}, {pipeline_mode = #tpu.pipeline_mode<synchronous>, transform_indices = @transform_1, window_bounds = array<i64: 128, 128>}, {pipeline_mode = #tpu.pipeline_mode<synchronous>, transform_indices = @transform_2, window_bounds = array<i64: 128, 128>}, {pipeline_mode = #tpu.pipeline_mode<synchronous>, transform_indices = @transform_3, window_bounds = array<i64: 128, 128>}, {pipeline_mode = #tpu.pipeline_mode<synchronous>, transform_indices = @transform_4, window_bounds = array<i64: 128, 128>}, {pipeline_mode = #tpu.pipeline_mode<synchronous>, transform_indices = @transform_5, window_bounds = array<i64: 128, 128>}, {pipeline_mode = #tpu.pipeline_mode<synchronous>, transform_indices = @transform_6, window_bounds = array<i64: 128, 128>}, {pipeline_mode = #tpu.pipeline_mode<synchronous>, transform_indices = @transform_7, window_bounds = array<i64: 128, 128>}, {pipeline_mode = #tpu.pipeline_mode<synchronous>, transform_indices = @transform_8, window_bounds = array<i64: 128, 128>}, {pipeline_mode = #tpu.pipeline_mode<synchronous>, transform_indices = @transform_9, window_bounds = array<i64: 8, 128>}, {transform_indices = @transform_10, window_bounds = array<i64: 8, 128>}, {transform_indices = @transform_11, window_bounds = array<i64: 8, 128>}, {transform_indices = @transform_12, window_bounds = array<i64: 8, 128>}, {transform_indices = @transform_13, window_bounds = array<i64: 8, 128>}, {transform_indices = @transform_14, window_bounds = array<i64: 8, 128>}, {transform_indices = @transform_15, window_bounds = array<i64: 8, 128>}, {transform_indices = @transform_16, window_bounds = array<i64: 8, 128>}, {transform_indices = @transform_17, window_bounds = array<i64: 8, 128>}]} {
    %c0 = arith.constant 0 : index
    %c0_0 = arith.constant 0 : index
    %0 = vector.load %arg1[%c0, %c0_0] : memref<8x128xf32, #tpu.memory_space<vmem>>, vector<8x128xf32>
    %c0_1 = arith.constant 0 : index
    %c0_2 = arith.constant 0 : index
    %1 = vector.load %arg2[%c0_1, %c0_2] : memref<128x128xf32, #tpu.memory_space<vmem>>, vector<128x128xf32>
    %c0_3 = arith.constant 0 : index
    %c0_4 = arith.constant 0 : index
    %2 = vector.load %arg10[%c0_3, %c0_4] : memref<8x128xf32, #tpu.memory_space<vmem>>, vector<1x128xf32>
    %cst = arith.constant dense<0.000000e+00> : vector<8x128xf32>
    %3 = tpu.matmul %0, %1, %cst {dimension_numbers = #tpu.dot_dimension_numbers<[1], [0], [0], [1], [0, 0, 1, 1], [], []>} : vector<8x128xf32>, vector<128x128xf32>, vector<8x128xf32> -> vector<8x128xf32>
    %4 = vector.broadcast %2 : vector<1x128xf32> to vector<8x128xf32>
    %5 = arith.addf %3, %4 : vector<8x128xf32>
    %cst_5 = arith.constant 0.000000e+00 : f32
    %6 = vector.broadcast %cst_5 : f32 to vector<8x128xf32>
    %7 = arith.maximumf %5, %6 : vector<8x128xf32>
    %c0_6 = arith.constant 0 : index
    %c0_7 = arith.constant 0 : index
    %8 = vector.load %arg11[%c0_6, %c0_7] : memref<8x128xf32, #tpu.memory_space<vmem>>, vector<8x128xf32>
    tpu.vector_store %arg11[%c0_6, %c0_7], %7 {strides = array<i32>} : memref<8x128xf32, #tpu.memory_space<vmem>>, vector<8x128xf32>,
    %c0_8 = arith.constant 0 : index
    %c0_9 = arith.constant 0 : index
    %9 = vector.load %arg3[%c0_8, %c0_9] : memref<128x128xf32, #tpu.memory_space<vmem>>, vector<128x128xf32>
    %c1 = arith.constant 1 : index
    %c0_10 = arith.constant 0 : index
    %10 = vector.load %arg10[%c1, %c0_10] : memref<8x128xf32, #tpu.memory_space<vmem>>, vector<1x128xf32>
    %cst_11 = arith.constant dense<0.000000e+00> : vector<8x128xf32>
    %11 = tpu.matmul %7, %9, %cst_11 {dimension_numbers = #tpu.dot_dimension_numbers<[1], [0], [0], [1], [0, 0, 1, 1], [], []>} : vector<8x128xf32>, vector<128x128xf32>, vector<8x128xf32> -> vector<8x128xf32>
    %12 = vector.broadcast %10 : vector<1x128xf32> to vector<8x128xf32>
    %13 = arith.addf %11, %12 : vector<8x128xf32>
    %cst_12 = arith.constant 0.000000e+00 : f32
    %14 = vector.broadcast %cst_12 : f32 to vector<8x128xf32>
    %15 = arith.maximumf %13, %14 : vector<8x128xf32>
    %c0_13 = arith.constant 0 : index
    %c0_14 = arith.constant 0 : index
    %16 = vector.load %arg12[%c0_13, %c0_14] : memref<8x128xf32, #tpu.memory_space<vmem>>, vector<8x128xf32>
    tpu.vector_store %arg12[%c0_13, %c0_14], %15 {strides = array<i32>} : memref<8x128xf32, #tpu.memory_space<vmem>>, vector<8x128xf32>,
    %c0_15 = arith.constant 0 : index
    %c0_16 = arith.constant 0 : index
    %17 = vector.load %arg4[%c0_15, %c0_16] : memref<128x128xf32, #tpu.memory_space<vmem>>, vector<128x128xf32>
    %c2 = arith.constant 2 : index
    %c0_17 = arith.constant 0 : index
    %18 = vector.load %arg10[%c2, %c0_17] : memref<8x128xf32, #tpu.memory_space<vmem>>, vector<1x128xf32>
    %cst_18 = arith.constant dense<0.000000e+00> : vector<8x128xf32>
    %19 = tpu.matmul %15, %17, %cst_18 {dimension_numbers = #tpu.dot_dimension_numbers<[1], [0], [0], [1], [0, 0, 1, 1], [], []>} : vector<8x128xf32>, vector<128x128xf32>, vector<8x128xf32> -> vector<8x128xf32>
    %20 = vector.broadcast %18 : vector<1x128xf32> to vector<8x128xf32>
    %21 = arith.addf %19, %20 : vector<8x128xf32>
    %cst_19 = arith.constant 0.000000e+00 : f32
    %22 = vector.broadcast %cst_19 : f32 to vector<8x128xf32>
    %23 = arith.maximumf %21, %22 : vector<8x128xf32>
    %c0_20 = arith.constant 0 : index
    %c0_21 = arith.constant 0 : index
    %24 = vector.load %arg13[%c0_20, %c0_21] : memref<8x128xf32, #tpu.memory_space<vmem>>, vector<8x128xf32>
    tpu.vector_store %arg13[%c0_20, %c0_21], %23 {strides = array<i32>} : memref<8x128xf32, #tpu.memory_space<vmem>>, vector<8x128xf32>,
    %c0_22 = arith.constant 0 : index
    %c0_23 = arith.constant 0 : index
    %25 = vector.load %arg5[%c0_22, %c0_23] : memref<128x128xf32, #tpu.memory_space<vmem>>, vector<128x128xf32>
    %c3 = arith.constant 3 : index
    %c0_24 = arith.constant 0 : index
    %26 = vector.load %arg10[%c3, %c0_24] : memref<8x128xf32, #tpu.memory_space<vmem>>, vector<1x128xf32>
    %cst_25 = arith.constant dense<0.000000e+00> : vector<8x128xf32>
    %27 = tpu.matmul %23, %25, %cst_25 {dimension_numbers = #tpu.dot_dimension_numbers<[1], [0], [0], [1], [0, 0, 1, 1], [], []>} : vector<8x128xf32>, vector<128x128xf32>, vector<8x128xf32> -> vector<8x128xf32>
    %28 = vector.broadcast %26 : vector<1x128xf32> to vector<8x128xf32>
    %29 = arith.addf %27, %28 : vector<8x128xf32>
    %cst_26 = arith.constant 0.000000e+00 : f32
    %30 = vector.broadcast %cst_26 : f32 to vector<8x128xf32>
    %31 = arith.maximumf %29, %30 : vector<8x128xf32>
    %c0_27 = arith.constant 0 : index
    %c0_28 = arith.constant 0 : index
    %32 = vector.load %arg14[%c0_27, %c0_28] : memref<8x128xf32, #tpu.memory_space<vmem>>, vector<8x128xf32>
    tpu.vector_store %arg14[%c0_27, %c0_28], %31 {strides = array<i32>} : memref<8x128xf32, #tpu.memory_space<vmem>>, vector<8x128xf32>,
    %c0_29 = arith.constant 0 : index
    %c0_30 = arith.constant 0 : index
    %33 = vector.load %arg6[%c0_29, %c0_30] : memref<128x128xf32, #tpu.memory_space<vmem>>, vector<128x128xf32>
    %c4 = arith.constant 4 : index
    %c0_31 = arith.constant 0 : index
    %34 = vector.load %arg10[%c4, %c0_31] : memref<8x128xf32, #tpu.memory_space<vmem>>, vector<1x128xf32>
    %cst_32 = arith.constant dense<0.000000e+00> : vector<8x128xf32>
    %35 = tpu.matmul %31, %33, %cst_32 {dimension_numbers = #tpu.dot_dimension_numbers<[1], [0], [0], [1], [0, 0, 1, 1], [], []>} : vector<8x128xf32>, vector<128x128xf32>, vector<8x128xf32> -> vector<8x128xf32>
    %36 = vector.broadcast %34 : vector<1x128xf32> to vector<8x128xf32>
    %37 = arith.addf %35, %36 : vector<8x128xf32>
    %cst_33 = arith.constant 0.000000e+00 : f32
    %38 = vector.broadcast %cst_33 : f32 to vector<8x128xf32>
    %39 = arith.maximumf %37, %38 : vector<8x128xf32>
    %c0_34 = arith.constant 0 : index
    %c0_35 = arith.constant 0 : index
    %40 = vector.load %arg15[%c0_34, %c0_35] : memref<8x128xf32, #tpu.memory_space<vmem>>, vector<8x128xf32>
    tpu.vector_store %arg15[%c0_34, %c0_35], %39 {strides = array<i32>} : memref<8x128xf32, #tpu.memory_space<vmem>>, vector<8x128xf32>,
    %c0_36 = arith.constant 0 : index
    %c0_37 = arith.constant 0 : index
    %41 = vector.load %arg7[%c0_36, %c0_37] : memref<128x128xf32, #tpu.memory_space<vmem>>, vector<128x128xf32>
    %c5 = arith.constant 5 : index
    %c0_38 = arith.constant 0 : index
    %42 = vector.load %arg10[%c5, %c0_38] : memref<8x128xf32, #tpu.memory_space<vmem>>, vector<1x128xf32>
    %cst_39 = arith.constant dense<0.000000e+00> : vector<8x128xf32>
    %43 = tpu.matmul %39, %41, %cst_39 {dimension_numbers = #tpu.dot_dimension_numbers<[1], [0], [0], [1], [0, 0, 1, 1], [], []>} : vector<8x128xf32>, vector<128x128xf32>, vector<8x128xf32> -> vector<8x128xf32>
    %44 = vector.broadcast %42 : vector<1x128xf32> to vector<8x128xf32>
    %45 = arith.addf %43, %44 : vector<8x128xf32>
    %cst_40 = arith.constant 0.000000e+00 : f32
    %46 = vector.broadcast %cst_40 : f32 to vector<8x128xf32>
    %47 = arith.maximumf %45, %46 : vector<8x128xf32>
    %c0_41 = arith.constant 0 : index
    %c0_42 = arith.constant 0 : index
    %48 = vector.load %arg16[%c0_41, %c0_42] : memref<8x128xf32, #tpu.memory_space<vmem>>, vector<8x128xf32>
    tpu.vector_store %arg16[%c0_41, %c0_42], %47 {strides = array<i32>} : memref<8x128xf32, #tpu.memory_space<vmem>>, vector<8x128xf32>,
    %c0_43 = arith.constant 0 : index
    %c0_44 = arith.constant 0 : index
    %49 = vector.load %arg8[%c0_43, %c0_44] : memref<128x128xf32, #tpu.memory_space<vmem>>, vector<128x128xf32>
    %c6 = arith.constant 6 : index
    %c0_45 = arith.constant 0 : index
    %50 = vector.load %arg10[%c6, %c0_45] : memref<8x128xf32, #tpu.memory_space<vmem>>, vector<1x128xf32>
    %cst_46 = arith.constant dense<0.000000e+00> : vector<8x128xf32>
    %51 = tpu.matmul %47, %49, %cst_46 {dimension_numbers = #tpu.dot_dimension_numbers<[1], [0], [0], [1], [0, 0, 1, 1], [], []>} : vector<8x128xf32>, vector<128x128xf32>, vector<8x128xf32> -> vector<8x128xf32>
    %52 = vector.broadcast %50 : vector<1x128xf32> to vector<8x128xf32>
    %53 = arith.addf %51, %52 : vector<8x128xf32>
    %cst_47 = arith.constant 0.000000e+00 : f32
    %54 = vector.broadcast %cst_47 : f32 to vector<8x128xf32>
    %55 = arith.maximumf %53, %54 : vector<8x128xf32>
    %c0_48 = arith.constant 0 : index
    %c0_49 = arith.constant 0 : index
    %56 = vector.load %arg17[%c0_48, %c0_49] : memref<8x128xf32, #tpu.memory_space<vmem>>, vector<8x128xf32>
    tpu.vector_store %arg17[%c0_48, %c0_49], %55 {strides = array<i32>} : memref<8x128xf32, #tpu.memory_space<vmem>>, vector<8x128xf32>,
    %c0_50 = arith.constant 0 : index
    %c0_51 = arith.constant 0 : index
    %57 = vector.load %arg9[%c0_50, %c0_51] : memref<128x128xf32, #tpu.memory_space<vmem>>, vector<128x128xf32>
    %c7 = arith.constant 7 : index
    %c0_52 = arith.constant 0 : index
    %58 = vector.load %arg10[%c7, %c0_52] : memref<8x128xf32, #tpu.memory_space<vmem>>, vector<1x128xf32>
    %cst_53 = arith.constant dense<0.000000e+00> : vector<8x128xf32>
    %59 = tpu.matmul %55, %57, %cst_53 {dimension_numbers = #tpu.dot_dimension_numbers<[1], [0], [0], [1], [0, 0, 1, 1], [], []>} : vector<8x128xf32>, vector<128x128xf32>, vector<8x128xf32> -> vector<8x128xf32>
    %60 = vector.broadcast %58 : vector<1x128xf32> to vector<8x128xf32>
    %61 = arith.addf %59, %60 : vector<8x128xf32>
    %62 = arith.negf %61 : vector<8x128xf32>
    %63 = math.exp %62 : vector<8x128xf32>
    %cst_54 = arith.constant 1.000000e+00 : f32
    %64 = vector.broadcast %cst_54 : f32 to vector<8x128xf32>
    %65 = arith.addf %64, %63 : vector<8x128xf32>
    %66 = arith.divf %64, %65 : vector<8x128xf32>
    %c0_55 = arith.constant 0 : index
    %c0_56 = arith.constant 0 : index
    %67 = vector.load %arg18[%c0_55, %c0_56] : memref<8x128xf32, #tpu.memory_space<vmem>>, vector<8x128xf32>
    tpu.vector_store %arg18[%c0_55, %c0_56], %66 {strides = array<i32>} : memref<8x128xf32, #tpu.memory_space<vmem>>, vector<8x128xf32>,
    return
  }
  func.func @transform_0(%arg0: i32) -> (i32, i32) {
    %c0_i32 = arith.constant 0 : i32
    %c0_i32_0 = arith.constant 0 : i32
    return %arg0, %c0_i32 : i32, i32
  }
  func.func @transform_1(%arg0: i32) -> (i32, i32) {
    %c0_i32 = arith.constant 0 : i32
    %c0_i32_0 = arith.constant 0 : i32
    %c0_i32_1 = arith.constant 0 : i32
    return %c0_i32, %c0_i32_0 : i32, i32
  }
  func.func @transform_2(%arg0: i32) -> (i32, i32) {
    %c0_i32 = arith.constant 0 : i32
    %c0_i32_0 = arith.constant 0 : i32
    %c0_i32_1 = arith.constant 0 : i32
    return %c0_i32, %c0_i32_0 : i32, i32
  }
  func.func @transform_3(%arg0: i32) -> (i32, i32) {
    %c0_i32 = arith.constant 0 : i32
    %c0_i32_0 = arith.constant 0 : i32
    %c0_i32_1 = arith.constant 0 : i32
    return %c0_i32, %c0_i32_0 : i32, i32
  }
  func.func @transform_4(%arg0: i32) -> (i32, i32) {
    %c0_i32 = arith.constant 0 : i32
    %c0_i32_0 = arith.constant 0 : i32
    %c0_i32_1 = arith.constant 0 : i32
    return %c0_i32, %c0_i32_0 : i32, i32
  }
  func.func @transform_5(%arg0: i32) -> (i32, i32) {
    %c0_i32 = arith.constant 0 : i32
    %c0_i32_0 = arith.constant 0 : i32
    %c0_i32_1 = arith.constant 0 : i32
    return %c0_i32, %c0_i32_0 : i32, i32
  }
  func.func @transform_6(%arg0: i32) -> (i32, i32) {
    %c0_i32 = arith.constant 0 : i32
    %c0_i32_0 = arith.constant 0 : i32
    %c0_i32_1 = arith.constant 0 : i32
    return %c0_i32, %c0_i32_0 : i32, i32
  }
  func.func @transform_7(%arg0: i32) -> (i32, i32) {
    %c0_i32 = arith.constant 0 : i32
    %c0_i32_0 = arith.constant 0 : i32
    %c0_i32_1 = arith.constant 0 : i32
    return %c0_i32, %c0_i32_0 : i32, i32
  }
  func.func @transform_8(%arg0: i32) -> (i32, i32) {
    %c0_i32 = arith.constant 0 : i32
    %c0_i32_0 = arith.constant 0 : i32
    %c0_i32_1 = arith.constant 0 : i32
    return %c0_i32, %c0_i32_0 : i32, i32
  }
  func.func @transform_9(%arg0: i32) -> (i32, i32) {
    %c0_i32 = arith.constant 0 : i32
    %c0_i32_0 = arith.constant 0 : i32
    %c0_i32_1 = arith.constant 0 : i32
    return %c0_i32, %c0_i32_0 : i32, i32
  }
  func.func @transform_10(%arg0: i32) -> (i32, i32) {
    %c0_i32 = arith.constant 0 : i32
    %c0_i32_0 = arith.constant 0 : i32
    return %arg0, %c0_i32 : i32, i32
  }
  func.func @transform_11(%arg0: i32) -> (i32, i32) {
    %c0_i32 = arith.constant 0 : i32
    %c0_i32_0 = arith.constant 0 : i32
    return %arg0, %c0_i32 : i32, i32
  }
  func.func @transform_12(%arg0: i32) -> (i32, i32) {
    %c0_i32 = arith.constant 0 : i32
    %c0_i32_0 = arith.constant 0 : i32
    return %arg0, %c0_i32 : i32, i32
  }
  func.func @transform_13(%arg0: i32) -> (i32, i32) {
    %c0_i32 = arith.constant 0 : i32
    %c0_i32_0 = arith.constant 0 : i32
    return %arg0, %c0_i32 : i32, i32
  }
  func.func @transform_14(%arg0: i32) -> (i32, i32) {
    %c0_i32 = arith.constant 0 : i32
    %c0_i32_0 = arith.constant 0 : i32
    return %arg0, %c0_i32 : i32, i32
  }
  func.func @transform_15(%arg0: i32) -> (i32, i32) {
    %c0_i32 = arith.constant 0 : i32
    %c0_i32_0 = arith.constant 0 : i32
    return %arg0, %c0_i32 : i32, i32
  }
  func.func @transform_16(%arg0: i32) -> (i32, i32) {
    %c0_i32 = arith.constant 0 : i32
    %c0_i32_0 = arith.constant 0 : i32
    return %arg0, %c0_i32 : i32, i32
  }
  func.func @transform_17(%arg0: i32) -> (i32, i32) {
    %c0_i32 = arith.constant 0 : i32
    %c0_i32_0 = arith.constant 0 : i32
    return %arg0, %c0_i32 : i32, i32
  }
}

module attributes {stable_mosaic.version = 11 : i64} {
  func.func @_mlp_chunk_kernel(%arg0: i32, %arg1: memref<8x128xf32, #tpu.memory_space<vmem>>, %arg2: memref<128x128xf32, #tpu.memory_space<vmem>>, %arg3: memref<128x128xf32, #tpu.memory_space<vmem>>, %arg4: memref<128x128xf32, #tpu.memory_space<vmem>>, %arg5: memref<128x128xf32, #tpu.memory_space<vmem>>, %arg6: memref<128x128xf32, #tpu.memory_space<vmem>>, %arg7: memref<128x128xf32, #tpu.memory_space<vmem>>, %arg8: memref<128x128xf32, #tpu.memory_space<vmem>>, %arg9: memref<128x128xf32, #tpu.memory_space<vmem>>, %arg10: memref<8x128xf32, #tpu.memory_space<vmem>>, %arg11: memref<8x128xf32, #tpu.memory_space<vmem>>, %arg12: memref<8x128xf32, #tpu.memory_space<vmem>>, %arg13: memref<8x128xf32, #tpu.memory_space<vmem>>, %arg14: memref<8x128xf32, #tpu.memory_space<vmem>>, %arg15: memref<8x128xf32, #tpu.memory_space<vmem>>, %arg16: memref<8x128xf32, #tpu.memory_space<vmem>>, %arg17: memref<8x128xf32, #tpu.memory_space<vmem>>, %arg18: memref<8x128xf32, #tpu.memory_space<vmem>>) attributes {dimension_semantics = [#tpu.dimension_semantics<parallel>], iteration_bounds = array<i64: 1>, scalar_prefetch = 0 : i64, scratch_operands = 0 : i64, tpu.core_type = #tpu.core_type<tc>, window_params = [{transform_indices = @transform_0, window_bounds = array<i64: 8, 128>}, {pipeline_mode = #tpu.pipeline_mode<synchronous>, transform_indices = @transform_1, window_bounds = array<i64: 128, 128>}, {pipeline_mode = #tpu.pipeline_mode<synchronous>, transform_indices = @transform_2, window_bounds = array<i64: 128, 128>}, {pipeline_mode = #tpu.pipeline_mode<synchronous>, transform_indices = @transform_3, window_bounds = array<i64: 128, 128>}, {pipeline_mode = #tpu.pipeline_mode<synchronous>, transform_indices = @transform_4, window_bounds = array<i64: 128, 128>}, {pipeline_mode = #tpu.pipeline_mode<synchronous>, transform_indices = @transform_5, window_bounds = array<i64: 128, 128>}, {pipeline_mode = #tpu.pipeline_mode<synchronous>, transform_indices = @transform_6, window_bounds = array<i64: 128, 128>}, {pipeline_mode = #tpu.pipeline_mode<synchronous>, transform_indices = @transform_7, window_bounds = array<i64: 128, 128>}, {pipeline_mode = #tpu.pipeline_mode<synchronous>, transform_indices = @transform_8, window_bounds = array<i64: 128, 128>}, {pipeline_mode = #tpu.pipeline_mode<synchronous>, transform_indices = @transform_9, window_bounds = array<i64: 8, 128>}, {transform_indices = @transform_10, window_bounds = array<i64: 8, 128>}, {transform_indices = @transform_11, window_bounds = array<i64: 8, 128>}, {transform_indices = @transform_12, window_bounds = array<i64: 8, 128>}, {transform_indices = @transform_13, window_bounds = array<i64: 8, 128>}, {transform_indices = @transform_14, window_bounds = array<i64: 8, 128>}, {transform_indices = @transform_15, window_bounds = array<i64: 8, 128>}, {transform_indices = @transform_16, window_bounds = array<i64: 8, 128>}, {transform_indices = @transform_17, window_bounds = array<i64: 8, 128>}]} {
    %c0 = arith.constant 0 : index
    %c0_0 = arith.constant 0 : index
    %0 = vector.load %arg1[%c0, %c0_0] : memref<8x128xf32, #tpu.memory_space<vmem>>, vector<8x128xf32>
    %c0_1 = arith.constant 0 : index
    %c0_2 = arith.constant 0 : index
    %1 = vector.load %arg2[%c0_1, %c0_2] : memref<128x128xf32, #tpu.memory_space<vmem>>, vector<128x128xf32>
    %c0_3 = arith.constant 0 : index
    %c0_4 = arith.constant 0 : index
    %2 = vector.load %arg10[%c0_3, %c0_4] : memref<8x128xf32, #tpu.memory_space<vmem>>, vector<1x128xf32>
    %cst = arith.constant dense<0.000000e+00> : vector<8x128xf32>
    %3 = tpu.matmul %0, %1, %cst {dimension_numbers = #tpu.dot_dimension_numbers<[1], [0], [0], [1], [0, 0, 1, 1], [], []>} : vector<8x128xf32>, vector<128x128xf32>, vector<8x128xf32> -> vector<8x128xf32>
    %4 = vector.broadcast %2 : vector<1x128xf32> to vector<8x128xf32>
    %5 = arith.addf %3, %4 : vector<8x128xf32>
    %cst_5 = arith.constant 0.000000e+00 : f32
    %6 = vector.broadcast %cst_5 : f32 to vector<8x128xf32>
    %7 = arith.maximumf %5, %6 : vector<8x128xf32>
    %c0_6 = arith.constant 0 : index
    %c0_7 = arith.constant 0 : index
    %8 = vector.load %arg11[%c0_6, %c0_7] : memref<8x128xf32, #tpu.memory_space<vmem>>, vector<8x128xf32>
    tpu.vector_store %arg11[%c0_6, %c0_7], %7 {strides = array<i32>} : memref<8x128xf32, #tpu.memory_space<vmem>>, vector<8x128xf32>,
    %c0_8 = arith.constant 0 : index
    %c0_9 = arith.constant 0 : index
    %9 = vector.load %arg3[%c0_8, %c0_9] : memref<128x128xf32, #tpu.memory_space<vmem>>, vector<128x128xf32>
    %c1 = arith.constant 1 : index
    %c0_10 = arith.constant 0 : index
    %10 = vector.load %arg10[%c1, %c0_10] : memref<8x128xf32, #tpu.memory_space<vmem>>, vector<1x128xf32>
    %cst_11 = arith.constant dense<0.000000e+00> : vector<8x128xf32>
    %11 = tpu.matmul %7, %9, %cst_11 {dimension_numbers = #tpu.dot_dimension_numbers<[1], [0], [0], [1], [0, 0, 1, 1], [], []>} : vector<8x128xf32>, vector<128x128xf32>, vector<8x128xf32> -> vector<8x128xf32>
    %12 = vector.broadcast %10 : vector<1x128xf32> to vector<8x128xf32>
    %13 = arith.addf %11, %12 : vector<8x128xf32>
    %cst_12 = arith.constant 0.000000e+00 : f32
    %14 = vector.broadcast %cst_12 : f32 to vector<8x128xf32>
    %15 = arith.maximumf %13, %14 : vector<8x128xf32>
    %c0_13 = arith.constant 0 : index
    %c0_14 = arith.constant 0 : index
    %16 = vector.load %arg12[%c0_13, %c0_14] : memref<8x128xf32, #tpu.memory_space<vmem>>, vector<8x128xf32>
    tpu.vector_store %arg12[%c0_13, %c0_14], %15 {strides = array<i32>} : memref<8x128xf32, #tpu.memory_space<vmem>>, vector<8x128xf32>,
    %c0_15 = arith.constant 0 : index
    %c0_16 = arith.constant 0 : index
    %17 = vector.load %arg4[%c0_15, %c0_16] : memref<128x128xf32, #tpu.memory_space<vmem>>, vector<128x128xf32>
    %c2 = arith.constant 2 : index
    %c0_17 = arith.constant 0 : index
    %18 = vector.load %arg10[%c2, %c0_17] : memref<8x128xf32, #tpu.memory_space<vmem>>, vector<1x128xf32>
    %cst_18 = arith.constant dense<0.000000e+00> : vector<8x128xf32>
    %19 = tpu.matmul %15, %17, %cst_18 {dimension_numbers = #tpu.dot_dimension_numbers<[1], [0], [0], [1], [0, 0, 1, 1], [], []>} : vector<8x128xf32>, vector<128x128xf32>, vector<8x128xf32> -> vector<8x128xf32>
    %20 = vector.broadcast %18 : vector<1x128xf32> to vector<8x128xf32>
    %21 = arith.addf %19, %20 : vector<8x128xf32>
    %cst_19 = arith.constant 0.000000e+00 : f32
    %22 = vector.broadcast %cst_19 : f32 to vector<8x128xf32>
    %23 = arith.maximumf %21, %22 : vector<8x128xf32>
    %c0_20 = arith.constant 0 : index
    %c0_21 = arith.constant 0 : index
    %24 = vector.load %arg13[%c0_20, %c0_21] : memref<8x128xf32, #tpu.memory_space<vmem>>, vector<8x128xf32>
    tpu.vector_store %arg13[%c0_20, %c0_21], %23 {strides = array<i32>} : memref<8x128xf32, #tpu.memory_space<vmem>>, vector<8x128xf32>,
    %c0_22 = arith.constant 0 : index
    %c0_23 = arith.constant 0 : index
    %25 = vector.load %arg5[%c0_22, %c0_23] : memref<128x128xf32, #tpu.memory_space<vmem>>, vector<128x128xf32>
    %c3 = arith.constant 3 : index
    %c0_24 = arith.constant 0 : index
    %26 = vector.load %arg10[%c3, %c0_24] : memref<8x128xf32, #tpu.memory_space<vmem>>, vector<1x128xf32>
    %cst_25 = arith.constant dense<0.000000e+00> : vector<8x128xf32>
    %27 = tpu.matmul %23, %25, %cst_25 {dimension_numbers = #tpu.dot_dimension_numbers<[1], [0], [0], [1], [0, 0, 1, 1], [], []>} : vector<8x128xf32>, vector<128x128xf32>, vector<8x128xf32> -> vector<8x128xf32>
    %28 = vector.broadcast %26 : vector<1x128xf32> to vector<8x128xf32>
    %29 = arith.addf %27, %28 : vector<8x128xf32>
    %cst_26 = arith.constant 0.000000e+00 : f32
    %30 = vector.broadcast %cst_26 : f32 to vector<8x128xf32>
    %31 = arith.maximumf %29, %30 : vector<8x128xf32>
    %c0_27 = arith.constant 0 : index
    %c0_28 = arith.constant 0 : index
    %32 = vector.load %arg14[%c0_27, %c0_28] : memref<8x128xf32, #tpu.memory_space<vmem>>, vector<8x128xf32>
    tpu.vector_store %arg14[%c0_27, %c0_28], %31 {strides = array<i32>} : memref<8x128xf32, #tpu.memory_space<vmem>>, vector<8x128xf32>,
    %c0_29 = arith.constant 0 : index
    %c0_30 = arith.constant 0 : index
    %33 = vector.load %arg6[%c0_29, %c0_30] : memref<128x128xf32, #tpu.memory_space<vmem>>, vector<128x128xf32>
    %c4 = arith.constant 4 : index
    %c0_31 = arith.constant 0 : index
    %34 = vector.load %arg10[%c4, %c0_31] : memref<8x128xf32, #tpu.memory_space<vmem>>, vector<1x128xf32>
    %cst_32 = arith.constant dense<0.000000e+00> : vector<8x128xf32>
    %35 = tpu.matmul %31, %33, %cst_32 {dimension_numbers = #tpu.dot_dimension_numbers<[1], [0], [0], [1], [0, 0, 1, 1], [], []>} : vector<8x128xf32>, vector<128x128xf32>, vector<8x128xf32> -> vector<8x128xf32>
    %36 = vector.broadcast %34 : vector<1x128xf32> to vector<8x128xf32>
    %37 = arith.addf %35, %36 : vector<8x128xf32>
    %cst_33 = arith.constant 0.000000e+00 : f32
    %38 = vector.broadcast %cst_33 : f32 to vector<8x128xf32>
    %39 = arith.maximumf %37, %38 : vector<8x128xf32>
    %c0_34 = arith.constant 0 : index
    %c0_35 = arith.constant 0 : index
    %40 = vector.load %arg15[%c0_34, %c0_35] : memref<8x128xf32, #tpu.memory_space<vmem>>, vector<8x128xf32>
    tpu.vector_store %arg15[%c0_34, %c0_35], %39 {strides = array<i32>} : memref<8x128xf32, #tpu.memory_space<vmem>>, vector<8x128xf32>,
    %c0_36 = arith.constant 0 : index
    %c0_37 = arith.constant 0 : index
    %41 = vector.load %arg7[%c0_36, %c0_37] : memref<128x128xf32, #tpu.memory_space<vmem>>, vector<128x128xf32>
    %c5 = arith.constant 5 : index
    %c0_38 = arith.constant 0 : index
    %42 = vector.load %arg10[%c5, %c0_38] : memref<8x128xf32, #tpu.memory_space<vmem>>, vector<1x128xf32>
    %cst_39 = arith.constant dense<0.000000e+00> : vector<8x128xf32>
    %43 = tpu.matmul %39, %41, %cst_39 {dimension_numbers = #tpu.dot_dimension_numbers<[1], [0], [0], [1], [0, 0, 1, 1], [], []>} : vector<8x128xf32>, vector<128x128xf32>, vector<8x128xf32> -> vector<8x128xf32>
    %44 = vector.broadcast %42 : vector<1x128xf32> to vector<8x128xf32>
    %45 = arith.addf %43, %44 : vector<8x128xf32>
    %cst_40 = arith.constant 0.000000e+00 : f32
    %46 = vector.broadcast %cst_40 : f32 to vector<8x128xf32>
    %47 = arith.maximumf %45, %46 : vector<8x128xf32>
    %c0_41 = arith.constant 0 : index
    %c0_42 = arith.constant 0 : index
    %48 = vector.load %arg16[%c0_41, %c0_42] : memref<8x128xf32, #tpu.memory_space<vmem>>, vector<8x128xf32>
    tpu.vector_store %arg16[%c0_41, %c0_42], %47 {strides = array<i32>} : memref<8x128xf32, #tpu.memory_space<vmem>>, vector<8x128xf32>,
    %c0_43 = arith.constant 0 : index
    %c0_44 = arith.constant 0 : index
    %49 = vector.load %arg8[%c0_43, %c0_44] : memref<128x128xf32, #tpu.memory_space<vmem>>, vector<128x128xf32>
    %c6 = arith.constant 6 : index
    %c0_45 = arith.constant 0 : index
    %50 = vector.load %arg10[%c6, %c0_45] : memref<8x128xf32, #tpu.memory_space<vmem>>, vector<1x128xf32>
    %cst_46 = arith.constant dense<0.000000e+00> : vector<8x128xf32>
    %51 = tpu.matmul %47, %49, %cst_46 {dimension_numbers = #tpu.dot_dimension_numbers<[1], [0], [0], [1], [0, 0, 1, 1], [], []>} : vector<8x128xf32>, vector<128x128xf32>, vector<8x128xf32> -> vector<8x128xf32>
    %52 = vector.broadcast %50 : vector<1x128xf32> to vector<8x128xf32>
    %53 = arith.addf %51, %52 : vector<8x128xf32>
    %cst_47 = arith.constant 0.000000e+00 : f32
    %54 = vector.broadcast %cst_47 : f32 to vector<8x128xf32>
    %55 = arith.maximumf %53, %54 : vector<8x128xf32>
    %c0_48 = arith.constant 0 : index
    %c0_49 = arith.constant 0 : index
    %56 = vector.load %arg17[%c0_48, %c0_49] : memref<8x128xf32, #tpu.memory_space<vmem>>, vector<8x128xf32>
    tpu.vector_store %arg17[%c0_48, %c0_49], %55 {strides = array<i32>} : memref<8x128xf32, #tpu.memory_space<vmem>>, vector<8x128xf32>,
    %c0_50 = arith.constant 0 : index
    %c0_51 = arith.constant 0 : index
    %57 = vector.load %arg9[%c0_50, %c0_51] : memref<128x128xf32, #tpu.memory_space<vmem>>, vector<128x128xf32>
    %c7 = arith.constant 7 : index
    %c0_52 = arith.constant 0 : index
    %58 = vector.load %arg10[%c7, %c0_52] : memref<8x128xf32, #tpu.memory_space<vmem>>, vector<1x128xf32>
    %cst_53 = arith.constant dense<0.000000e+00> : vector<8x128xf32>
    %59 = tpu.matmul %55, %57, %cst_53 {dimension_numbers = #tpu.dot_dimension_numbers<[1], [0], [0], [1], [0, 0, 1, 1], [], []>} : vector<8x128xf32>, vector<128x128xf32>, vector<8x128xf32> -> vector<8x128xf32>
    %60 = vector.broadcast %58 : vector<1x128xf32> to vector<8x128xf32>
    %61 = arith.addf %59, %60 : vector<8x128xf32>
    %62 = arith.negf %61 : vector<8x128xf32>
    %63 = math.exp %62 : vector<8x128xf32>
    %cst_54 = arith.constant 1.000000e+00 : f32
    %64 = vector.broadcast %cst_54 : f32 to vector<8x128xf32>
    %65 = arith.addf %64, %63 : vector<8x128xf32>
    %66 = arith.divf %64, %65 : vector<8x128xf32>
    %c0_55 = arith.constant 0 : index
    %c0_56 = arith.constant 0 : index
    %67 = vector.load %arg18[%c0_55, %c0_56] : memref<8x128xf32, #tpu.memory_space<vmem>>, vector<8x128xf32>
    tpu.vector_store %arg18[%c0_55, %c0_56], %66 {strides = array<i32>} : memref<8x128xf32, #tpu.memory_space<vmem>>, vector<8x128xf32>,
    return
  }
  func.func @transform_0(%arg0: i32) -> (i32, i32) {
    %c0_i32 = arith.constant 0 : i32
    %c0_i32_0 = arith.constant 0 : i32
    return %arg0, %c0_i32 : i32, i32
  }
  func.func @transform_1(%arg0: i32) -> (i32, i32) {
    %c0_i32 = arith.constant 0 : i32
    %c0_i32_0 = arith.constant 0 : i32
    %c0_i32_1 = arith.constant 0 : i32
    return %c0_i32, %c0_i32_0 : i32, i32
  }
  func.func @transform_2(%arg0: i32) -> (i32, i32) {
    %c0_i32 = arith.constant 0 : i32
    %c0_i32_0 = arith.constant 0 : i32
    %c0_i32_1 = arith.constant 0 : i32
    return %c0_i32, %c0_i32_0 : i32, i32
  }
  func.func @transform_3(%arg0: i32) -> (i32, i32) {
    %c0_i32 = arith.constant 0 : i32
    %c0_i32_0 = arith.constant 0 : i32
    %c0_i32_1 = arith.constant 0 : i32
    return %c0_i32, %c0_i32_0 : i32, i32
  }
  func.func @transform_4(%arg0: i32) -> (i32, i32) {
    %c0_i32 = arith.constant 0 : i32
    %c0_i32_0 = arith.constant 0 : i32
    %c0_i32_1 = arith.constant 0 : i32
    return %c0_i32, %c0_i32_0 : i32, i32
  }
  func.func @transform_5(%arg0: i32) -> (i32, i32) {
    %c0_i32 = arith.constant 0 : i32
    %c0_i32_0 = arith.constant 0 : i32
    %c0_i32_1 = arith.constant 0 : i32
    return %c0_i32, %c0_i32_0 : i32, i32
  }
  func.func @transform_6(%arg0: i32) -> (i32, i32) {
    %c0_i32 = arith.constant 0 : i32
    %c0_i32_0 = arith.constant 0 : i32
    %c0_i32_1 = arith.constant 0 : i32
    return %c0_i32, %c0_i32_0 : i32, i32
  }
  func.func @transform_7(%arg0: i32) -> (i32, i32) {
    %c0_i32 = arith.constant 0 : i32
    %c0_i32_0 = arith.constant 0 : i32
    %c0_i32_1 = arith.constant 0 : i32
    return %c0_i32, %c0_i32_0 : i32, i32
  }
  func.func @transform_8(%arg0: i32) -> (i32, i32) {
    %c0_i32 = arith.constant 0 : i32
    %c0_i32_0 = arith.constant 0 : i32
    %c0_i32_1 = arith.constant 0 : i32
    return %c0_i32, %c0_i32_0 : i32, i32
  }
  func.func @transform_9(%arg0: i32) -> (i32, i32) {
    %c0_i32 = arith.constant 0 : i32
    %c0_i32_0 = arith.constant 0 : i32
    %c0_i32_1 = arith.constant 0 : i32
    return %c0_i32, %c0_i32_0 : i32, i32
  }
  func.func @transform_10(%arg0: i32) -> (i32, i32) {
    %c0_i32 = arith.constant 0 : i32
    %c0_i32_0 = arith.constant 0 : i32
    return %arg0, %c0_i32 : i32, i32
  }
  func.func @transform_11(%arg0: i32) -> (i32, i32) {
    %c0_i32 = arith.constant 0 : i32
    %c0_i32_0 = arith.constant 0 : i32
    return %arg0, %c0_i32 : i32, i32
  }
  func.func @transform_12(%arg0: i32) -> (i32, i32) {
    %c0_i32 = arith.constant 0 : i32
    %c0_i32_0 = arith.constant 0 : i32
    return %arg0, %c0_i32 : i32, i32
  }
  func.func @transform_13(%arg0: i32) -> (i32, i32) {
    %c0_i32 = arith.constant 0 : i32
    %c0_i32_0 = arith.constant 0 : i32
    return %arg0, %c0_i32 : i32, i32
  }
  func.func @transform_14(%arg0: i32) -> (i32, i32) {
    %c0_i32 = arith.constant 0 : i32
    %c0_i32_0 = arith.constant 0 : i32
    return %arg0, %c0_i32 : i32, i32
  }
  func.func @transform_15(%arg0: i32) -> (i32, i32) {
    %c0_i32 = arith.constant 0 : i32
    %c0_i32_0 = arith.constant 0 : i32
    return %arg0, %c0_i32 : i32, i32
  }
  func.func @transform_16(%arg0: i32) -> (i32, i32) {
    %c0_i32 = arith.constant 0 : i32
    %c0_i32_0 = arith.constant 0 : i32
    return %arg0, %c0_i32 : i32, i32
  }
  func.func @transform_17(%arg0: i32) -> (i32, i32) {
    %c0_i32 = arith.constant 0 : i32
    %c0_i32_0 = arith.constant 0 : i32
    return %arg0, %c0_i32 : i32, i32
  }
}

</mosaic_0001>

<bundles_post_ra>
// kernel: tpu_custom_call.1
= control target key start
LH: loop header
LB: loop body
LE: loop exit
PB: predicated region body
PF: predicated region fallthrough
CT: control target
= control target key end

     0   :  { %s2513_s0 = inlined_call_operand.hbm [shape: f32[8,128], index: 0, kind: input, shape index: {}]   ;;  %s2514_s1 = inlined_call_operand.hbm [shape: f32[128,128], index: 1, kind: input, shape index: {}]   ;;  %s2515_s2 = inlined_call_operand.hbm [shape: f32[128,128], index: 2, kind: input, shape index: {}]   ;;  %s2516_s3 = inlined_call_operand.hbm [shape: f32[128,128], index: 3, kind: input, shape index: {}]   ;;  %s2517_s4 = inlined_call_operand.hbm [shape: f32[128,128], index: 4, kind: input, shape index: {}]   ;;  %s2518_s5 = inlined_call_operand.hbm [shape: f32[128,128], index: 5, kind: input, shape index: {}]   ;;  %s2519_s6 = inlined_call_operand.hbm [shape: f32[128,128], index: 6, kind: input, shape index: {}]   ;;  %s2520_s7 = inlined_call_operand.hbm [shape: f32[128,128], index: 7, kind: input, shape index: {}]   ;;  %s2521_s8 = inlined_call_operand.hbm [shape: f32[128,128], index: 8, kind: input, shape index: {}]   ;;  %s2522_s9 = inlined_call_operand.vmem [shape: f32[8,128], index: 9, kind: input, shape index: {}]   ;;  %s2523_s10 = inlined_call_operand.hbm [shape: f32[8,128], index: 10, kind: output, shape index: {0}]   ;;  %s2524_s11 = inlined_call_operand.hbm [shape: f32[8,128], index: 11, kind: output, shape index: {1}]   ;;  %s2525_s12 = inlined_call_operand.hbm [shape: f32[8,128], index: 12, kind: output, shape index: {2}]   ;;  %s2526_s13 = inlined_call_operand.hbm [shape: f32[8,128], index: 13, kind: output, shape index: {3}]   ;;  %s2527_s14 = inlined_call_operand.hbm [shape: f32[8,128], index: 14, kind: output, shape index: {4}]   ;;  %s2528_s15 = inlined_call_operand.hbm [shape: f32[8,128], index: 15, kind: output, shape index: {5}]   ;;  %s2529_s16 = inlined_call_operand.hbm [shape: f32[8,128], index: 16, kind: output, shape index: {6}]   ;;  %s2530_s17 = inlined_call_operand.hbm [shape: f32[8,128], index: 17, kind: output, shape index: {7}]  }
   0x1   :  { %2535 = sst [smem:[#allocation39_spill]] %s2513_s0 }
   0x2   :  { %2536 = sst [smem:[#allocation40_spill]] %s2514_s1 }
   0x3   :  { %2537 = sst [smem:[#allocation41_spill]] %s2529_s16 }
   0x4   :  { %2538 = sst [smem:[#allocation42_spill]] %s2530_s17 }
   0x5   :  { %23 = vsyncpa [#allocation3], 0 }
   0x6   :  { %24 = vsyncpa [#allocation6], 0 }
   0x7   :  { %25 = vsyncpa [#allocation9], 0 }
   0x8   :  { %26 = vsyncpa [#allocation12], 0 }
   0x9   :  { %27 = vsyncpa [#allocation15], 0 }
   0xa   :  { %28 = vsyncpa [#allocation4], 0 }
   0xb   :  { %29 = vsyncpa [#allocation19], 0 }
   0xc   :  { %30 = vsyncpa [#allocation22], 0 }
   0xd   :  { %31 = vsyncpa [#allocation25], 0 }
   0xe   :  { %32 = vsyncpa [#allocation28], 0  ;;  %s2069_s24 = smov [#allocation5]   ;;  %s2539_s28 = sld [smem:[#allocation40_spill]] }
   0xf   :  { %s48_s25 = sshll.u32 %s2069_s24, 4  ;;  %s49_s25 = int_to_ptr.vmem [resolvable:$true] %s48_s25 }
  0x14   :  { %s1675_s29 = scalar_lea.hbm %s2539_s28, 2048 }
  0x15   :  { %p1676_p0 = scmp.ne.s32.totalorder %s2539_s28, %s1675_s29  ;;  %p1679_p1 = scmp.lt.u32.totalorder %s1675_s29, %s2539_s28 }
  0x17   :  { %p1681_p2 = pnand %p1679_p1, %p1676_p0 }
  0x19   :  { %1684 = shalt.err (!%p1681_p2)
}
  0x1a   :  { %s1685_s1 = scalar_lea.vmem %s49_s25, 2048  ;;  %p1690_p4 = scmp.lt.s32.totalorder %s49_s25, %s49_s25 }
  0x1b   :  { %p1686_p3 = scmp.ne.s32.totalorder %s49_s25, %s1685_s1  ;;  %p1691_p5 = scmp.lt.s32.totalorder %s1685_s1, %s1685_s1 }
  0x1d   :  { %p1692_p6 = por %p1691_p5, %p1690_p4 }
  0x1f   :  { %p1693_p7 = pnand %p1692_p6, %p1686_p3 }
  0x21   :  { %1696 = shalt.err (!%p1693_p7)
}
  0x22   :  { %s2070_s20 = smov 128   ;;  %s2071_s21 = smov 8  }
  0x23   :  { %54 = dma.hbm_to_vmem [thread:$0]  %s2539_s28, 2048, %s49_s25, [#allocation6], %s2070_s20, %s2070_s20, %s2071_s21  }
  0x24   :  { %s2072_s24 = smov [#allocation8]   ;;  %s2073_s27 = smov [#allocation11]  }
  0x25   :  { %s72_s26 = sshll.u32 %s2072_s24, 4  ;;  %s96_s29 = sshll.u32 %s2073_s27, 4  ;;  %s73_s26 = int_to_ptr.vmem [resolvable:$true] %s72_s26  ;;  %s97_s29 = int_to_ptr.vmem [resolvable:$true] %s96_s29 }
  0x26   :  { %s1697_s18 = scalar_lea.hbm %s2516_s3, 2048 }
  0x27   :  { %p1698_p8 = scmp.ne.s32.totalorder %s2516_s3, %s1697_s18  ;;  %p1701_p9 = scmp.lt.u32.totalorder %s1697_s18, %s2516_s3 }
  0x29   :  { %p1703_p10 = pnand %p1701_p9, %p1698_p8 }
  0x2b   :  { %1706 = shalt.err (!%p1703_p10)
}
  0x2c   :  { %s1707_s25 = scalar_lea.vmem %s73_s26, 2048  ;;  %p1712_p12 = scmp.lt.s32.totalorder %s73_s26, %s73_s26 }
  0x2d   :  { %p1708_p11 = scmp.ne.s32.totalorder %s73_s26, %s1707_s25  ;;  %p1713_p13 = scmp.lt.s32.totalorder %s1707_s25, %s1707_s25 }
  0x2f   :  { %p1714_p0 = por %p1713_p13, %p1712_p12 }
  0x31   :  { %p1715_p1 = pnand %p1714_p0, %p1708_p11 }
  0x33   :  { %1718 = shalt.err (!%p1715_p1)
}
  0x34   :  { %78 = dma.hbm_to_vmem [thread:$0]  %s2516_s3, 2048, %s73_s26, [#allocation9], %s2070_s20, %s2070_s20, %s2071_s21  }
  0x35   :  { %s1719_s17 = scalar_lea.hbm %s2518_s5, 2048 }
  0x36   :  { %p1720_p2 = scmp.ne.s32.totalorder %s2518_s5, %s1719_s17  ;;  %p1723_p3 = scmp.lt.u32.totalorder %s1719_s17, %s2518_s5 }
  0x38   :  { %p1725_p4 = pnand %p1723_p3, %p1720_p2 }
  0x3a   :  { %1728 = shalt.err (!%p1725_p4)
}
  0x3b   :  { %s1729_s18 = scalar_lea.vmem %s97_s29, 2048  ;;  %p1734_p6 = scmp.lt.s32.totalorder %s97_s29, %s97_s29 }
  0x3c   :  { %p1730_p5 = scmp.ne.s32.totalorder %s97_s29, %s1729_s18  ;;  %p1735_p7 = scmp.lt.s32.totalorder %s1729_s18, %s1729_s18 }
  0x3e   :  { %p1736_p8 = por %p1735_p7, %p1734_p6 }
  0x40   :  { %p1737_p9 = pnand %p1736_p8, %p1730_p5 }
  0x42   :  { %1740 = shalt.err (!%p1737_p9)
}
  0x43   :  { %102 = dma.hbm_to_vmem [thread:$0]  %s2518_s5, 2048, %s97_s29, [#allocation12], %s2070_s20, %s2070_s20, %s2071_s21  }
  0x44   :  { %s2074_s19 = smov [#allocation14]   ;;  %s2075_s25 = smov [#allocation2]  }
  0x45   :  { %s120_s1 = sshll.u32 %s2074_s19, 4  ;;  %s39_s28 = sshll.u32 %s2075_s25, 4  ;;  %s121_s1 = int_to_ptr.vmem [resolvable:$true] %s120_s1  ;;  %s40_s28 = int_to_ptr.vmem [resolvable:$true] %s39_s28 }
  0x46   :  { %s1741_s16 = scalar_lea.hbm %s2520_s7, 2048 }
  0x47   :  { %p1742_p10 = scmp.ne.s32.totalorder %s2520_s7, %s1741_s16  ;;  %p1745_p11 = scmp.lt.u32.totalorder %s1741_s16, %s2520_s7 }
  0x49   :  { %p1747_p12 = pnand %p1745_p11, %p1742_p10 }
  0x4b   :  { %1750 = shalt.err (!%p1747_p12)
}
  0x4c   :  { %s1751_s5 = scalar_lea.vmem %s121_s1, 2048  ;;  %p1756_p0 = scmp.lt.s32.totalorder %s121_s1, %s121_s1 }
  0x4d   :  { %p1752_p13 = scmp.ne.s32.totalorder %s121_s1, %s1751_s5  ;;  %p1757_p1 = scmp.lt.s32.totalorder %s1751_s5, %s1751_s5 }
  0x4f   :  { %p1758_p2 = por %p1757_p1, %p1756_p0 }
  0x51   :  { %p1759_p3 = pnand %p1758_p2, %p1752_p13 }
  0x53   :  { %1762 = shalt.err (!%p1759_p3)
}
  0x54   :  { %126 = dma.hbm_to_vmem [thread:$0]  %s2520_s7, 2048, %s121_s1, [#allocation15], %s2070_s20, %s2070_s20, %s2071_s21  }
  0x55   :  { %s2540_s26 = sld [smem:[#allocation39_spill]] }
  0x5b   :  { %s1763_s19 = scalar_lea.hbm %s2540_s26, 128 }
  0x5c   :  { %p1764_p4 = scmp.ne.s32.totalorder %s2540_s26, %s1763_s19  ;;  %p1767_p5 = scmp.lt.u32.totalorder %s1763_s19, %s2540_s26 }
  0x5e   :  { %p1769_p6 = pnand %p1767_p5, %p1764_p4 }
  0x60   :  { %1772 = shalt.err (!%p1769_p6)
}
  0x61   :  { %s1773_s17 = scalar_lea.vmem %s40_s28, 128  ;;  %p1778_p8 = scmp.lt.s32.totalorder %s40_s28, %s40_s28 }
  0x62   :  { %p1774_p7 = scmp.ne.s32.totalorder %s40_s28, %s1773_s17  ;;  %p1779_p9 = scmp.lt.s32.totalorder %s1773_s17, %s1773_s17 }
  0x64   :  { %p1780_p10 = por %p1779_p9, %p1778_p8 }
  0x66   :  { %p1781_p11 = pnand %p1780_p10, %p1774_p7 }
  0x68   :  { %1784 = shalt.err (!%p1781_p11)
}
  0x69   :  { %42 = dma.hbm_to_vmem [thread:$0]  %s2540_s26, 128, %s40_s28, [#allocation3]  }
  0x6a   :  { %s2076_s24 = smov [#allocation7]   ;;  %s2077_s0 = smov [#allocation10]  }
  0x6b   :  { %s60_s27 = sshll.u32 %s2076_s24, 4  ;;  %s84_s5 = sshll.u32 %s2077_s0, 4  ;;  %s61_s27 = int_to_ptr.vmem [resolvable:$true] %s60_s27  ;;  %s85_s5 = int_to_ptr.vmem [resolvable:$true] %s84_s5 }
  0x6c   :  { %s1785_s18 = scalar_lea.hbm %s2515_s2, 2048 }
  0x6d   :  { %p1786_p12 = scmp.ne.s32.totalorder %s2515_s2, %s1785_s18  ;;  %p1789_p13 = scmp.lt.u32.totalorder %s1785_s18, %s2515_s2 }
  0x6f   :  { %p1791_p0 = pnand %p1789_p13, %p1786_p12 }
  0x71   :  { %1794 = shalt.err (!%p1791_p0)
}
  0x72   :  { %s1795_s28 = scalar_lea.vmem %s61_s27, 2048  ;;  %p1800_p2 = scmp.lt.s32.totalorder %s61_s27, %s61_s27 }
  0x73   :  { %p1796_p1 = scmp.ne.s32.totalorder %s61_s27, %s1795_s28  ;;  %p1801_p3 = scmp.lt.s32.totalorder %s1795_s28, %s1795_s28 }
  0x75   :  { %p1802_p4 = por %p1801_p3, %p1800_p2 }
  0x77   :  { %p1803_p5 = pnand %p1802_p4, %p1796_p1 }
  0x79   :  { %1806 = shalt.err (!%p1803_p5)
}
  0x7a   :  { %66 = dma.hbm_to_vmem [thread:$0]  %s2515_s2, 2048, %s61_s27, [#allocation6], %s2070_s20, %s2070_s20, %s2071_s21  }
  0x7b   :  { %s1807_s7 = scalar_lea.hbm %s2517_s4, 2048 }
  0x7c   :  { %p1808_p6 = scmp.ne.s32.totalorder %s2517_s4, %s1807_s7  ;;  %p1811_p7 = scmp.lt.u32.totalorder %s1807_s7, %s2517_s4 }
  0x7e   :  { %p1813_p8 = pnand %p1811_p7, %p1808_p6 }
  0x80   :  { %1816 = shalt.err (!%p1813_p8)
}
  0x81   :  { %s1817_s30 = scalar_lea.vmem %s85_s5, 2048  ;;  %p1822_p10 = scmp.lt.s32.totalorder %s85_s5, %s85_s5 }
  0x82   :  { %p1818_p9 = scmp.ne.s32.totalorder %s85_s5, %s1817_s30  ;;  %p1823_p11 = scmp.lt.s32.totalorder %s1817_s30, %s1817_s30 }
  0x84   :  { %p1824_p12 = por %p1823_p11, %p1822_p10 }
  0x86   :  { %p1825_p13 = pnand %p1824_p12, %p1818_p9 }
  0x88   :  { %1828 = shalt.err (!%p1825_p13)
}
  0x89   :  { %90 = dma.hbm_to_vmem [thread:$0]  %s2517_s4, 2048, %s85_s5, [#allocation9], %s2070_s20, %s2070_s20, %s2071_s21  }
  0x8a   :  { %s2078_s18 = smov [#allocation13]   ;;  %s2079_s19 = smov [#allocation16]  }
  0x8b   :  { %s108_s3 = sshll.u32 %s2078_s18, 4  ;;  %s132_s25 = sshll.u32 %s2079_s19, 4  ;;  %s109_s3 = int_to_ptr.vmem [resolvable:$true] %s108_s3  ;;  %s133_s25 = int_to_ptr.vmem [resolvable:$true] %s132_s25 }
  0x8c   :  { %s1829_s26 = scalar_lea.hbm %s2519_s6, 2048 }
  0x8d   :  { %p1830_p0 = scmp.ne.s32.totalorder %s2519_s6, %s1829_s26  ;;  %p1833_p1 = scmp.lt.u32.totalorder %s1829_s26, %s2519_s6 }
  0x8f   :  { %p1835_p2 = pnand %p1833_p1, %p1830_p0 }
  0x91   :  { %1838 = shalt.err (!%p1835_p2)
}
  0x92   :  { %s1839_s4 = scalar_lea.vmem %s109_s3, 2048  ;;  %p1844_p4 = scmp.lt.s32.totalorder %s109_s3, %s109_s3 }
  0x93   :  { %p1840_p3 = scmp.ne.s32.totalorder %s109_s3, %s1839_s4  ;;  %p1845_p5 = scmp.lt.s32.totalorder %s1839_s4, %s1839_s4 }
  0x95   :  { %p1846_p6 = por %p1845_p5, %p1844_p4 }
  0x97   :  { %p1847_p7 = pnand %p1846_p6, %p1840_p3 }
  0x99   :  { %1850 = shalt.err (!%p1847_p7)
}
  0x9a   :  { %114 = dma.hbm_to_vmem [thread:$0]  %s2519_s6, 2048, %s109_s3, [#allocation12], %s2070_s20, %s2070_s20, %s2071_s21  }
  0x9b   :  { %s1851_s29 = scalar_lea.hbm %s2521_s8, 2048 }
  0x9c   :  { %p1852_p8 = scmp.ne.s32.totalorder %s2521_s8, %s1851_s29  ;;  %p1855_p9 = scmp.lt.u32.totalorder %s1851_s29, %s2521_s8 }
  0x9e   :  { %p1857_p10 = pnand %p1855_p9, %p1852_p8 }
  0xa0   :  { %1860 = shalt.err (!%p1857_p10)
}
  0xa1   :  { %s1861_s19 = scalar_lea.vmem %s133_s25, 2048  ;;  %p1866_p12 = scmp.lt.s32.totalorder %s133_s25, %s133_s25 }
  0xa2   :  { %p1862_p11 = scmp.ne.s32.totalorder %s133_s25, %s1861_s19  ;;  %p1867_p13 = scmp.lt.s32.totalorder %s1861_s19, %s1861_s19 }
  0xa4   :  { %p1868_p0 = por %p1867_p13, %p1866_p12 }
  0xa6   :  { %p1869_p1 = pnand %p1868_p0, %p1862_p11 }
  0xa8   :  { %1872 = shalt.err (!%p1869_p1)
}
  0xa9   :  { %138 = dma.hbm_to_vmem [thread:$0]  %s2521_s8, 2048, %s133_s25, [#allocation15], %s2070_s20, %s2070_s20, %s2071_s21  }
  0xaa   :  { %2049 = dma.done.wait [#allocation3], 128  }
  0xab   :  { %2050 = vsyncadd [#allocation3], 4294967168 }
  0xac   :  { %2051 = dma.done.wait [#allocation6], 4096  }
  0xad   :  { %2052 = vsyncadd [#allocation6], 4294963200 }
  0xae   :  { %2053 = dma.done.wait [#allocation9], 4096  }
  0xaf   :  { %2054 = vsyncadd [#allocation9], 4294963200 }
  0xb0   :  { %2055 = dma.done.wait [#allocation12], 4096  }
  0xb1   :  { %2056 = vsyncadd [#allocation12], 4294963200 }
  0xb2   :  { %2057 = dma.done.wait [#allocation15], 4096  }
  0xb3   :  { %2058 = vsyncadd [#allocation15], 4294963200  ;;  %v2080_v0 = vmov 0.0|0.0   ;;  %vm2081_vm0 = vmmov 0   ;;  %v2082_v1 = vmov 0.0   ;;  %v169_v2 = vld [vmem:[#allocation5] sm:$0xff] }
  0xb4   :  { %1457 = vmatprep.subr.bf16.mxu0 %v2080_v0  ;;  %1209 = vmatprep.mubr.msk.f32.mxu0 %vm2081_vm0, %v2082_v1  ;;  %v170_v3 = vld [vmem:[#allocation5 + $0x8] sm:$0xff]  ;;  %v171_v4 = vld [vmem:[#allocation5 + $0x10] sm:$0xff]  ;;  %v172_v6 = vld [vmem:[#allocation5 + $0x18] sm:$0xff]  ;;  %s2083_s24 = smov [#allocation18]   ;;  %s2084_s29 = smov [#allocation21]  }
  0xb5   :  { %1481 = vmatprep.subr.bf16.mxu1 %v2080_v0  ;;  %1244 = vmatprep.mubr.msk.f32.mxu1 %vm2081_vm0, %v2082_v1  ;;  %v1458_v5 = vpack.c.bf16 %v170_v3, %v169_v2  ;;  %v1461_v7 = vpack.c.bf16 %v172_v6, %v171_v4  ;;  %v173_v8 = vld [vmem:[#allocation5 + $0x20] sm:$0xff]  ;;  %v174_v9 = vld [vmem:[#allocation5 + $0x28] sm:$0xff]  ;;  %v264_v12 = vld [vmem:[#allocation7 + $0x10] sm:$0xff]  ;;  %s934_s0 = sshll.u32 %s2083_s24, 4  ;;  %s954_s30 = sshll.u32 %s2084_s29, 4  ;;  %s935_s0 = int_to_ptr.vmem [resolvable:$true] %s934_s0  ;;  %s955_s30 = int_to_ptr.vmem [resolvable:$true] %s954_s30 }
  0xb6   :  { %v262_v10 = vld [vmem:[#allocation7] sm:$0xff]  ;;  %v263_v11 = vld [vmem:[#allocation7 + $0x8] sm:$0xff]  ;;  %v265_v13 = vld [vmem:[#allocation7 + $0x18] sm:$0xff]  ;;  %v1464_v14 = vpack.c.bf16 %v174_v9, %v173_v8  ;;  %s1873_s2 = scalar_lea.vmem %s935_s0, 128  ;;  %p1878_p3 = scmp.lt.s32.totalorder %s935_s0, %s935_s0 }
  0xb7   :  { %1459 = vmatpush3.bf16.msra.mxu0 %v1458_v5  ;;  %v1482_v15 = vpack.c.bf16 %v263_v11, %v262_v10  ;;  %v175_v16 = vld [vmem:[#allocation5 + $0x30] sm:$0xff]  ;;  %v176_v17 = vld [vmem:[#allocation5 + $0x38] sm:$0xff]  ;;  %v1485_v18 = vpack.c.bf16 %v265_v13, %v264_v12  ;;  %v266_v19 = vld [vmem:[#allocation7 + $0x20] sm:$0xff]  ;;  %p1874_p2 = scmp.ne.s32.totalorder %s935_s0, %s1873_s2  ;;  %p1879_p4 = scmp.lt.s32.totalorder %s1873_s2, %s1873_s2 }
  0xb8   :  { %1460 = vmatprep.subr.bf16.mxu0 %v2080_v0  ;;  %v267_v20 = vld [vmem:[#allocation7 + $0x28] sm:$0xff]  ;;  %v1467_v21 = vpack.c.bf16 %v176_v17, %v175_v16  ;;  %v177_v22 = vld [vmem:[#allocation5 + $0x40] sm:$0xff]  ;;  %v268_v25 = vld [vmem:[#allocation7 + $0x30] sm:$0xff] }
  0xb9   :  { %1483 = vmatpush3.bf16.msra.mxu1 %v1482_v15  ;;  %v178_v23 = vld [vmem:[#allocation5 + $0x48] sm:$0xff]  ;;  %v1488_v24 = vpack.c.bf16 %v267_v20, %v266_v19  ;;  %v269_v26 = vld [vmem:[#allocation7 + $0x38] sm:$0xff]  ;;  %v179_v28 = vld [vmem:[#allocation5 + $0x50] sm:$0xff]  ;;  %p1880_p5 = por %p1879_p4, %p1878_p3 }
  0xba   :  { %1484 = vmatprep.subr.bf16.mxu1 %v2080_v0  ;;  %v1470_v27 = vpack.c.bf16 %v178_v23, %v177_v22  ;;  %v180_v29 = vld [vmem:[#allocation5 + $0x58] sm:$0xff]  ;;  %v1491_v30 = vpack.c.bf16 %v269_v26, %v268_v25  ;;  %v270_v31 = vld [vmem:[#allocation7 + $0x40] sm:$0xff]  ;;  %v271_v32 = vld [vmem:[#allocation7 + $0x48] sm:$0xff] }
  0xbb   :  { %1462 = vmatpush3.bf16.msra.mxu0 %v1461_v7  ;;  %v1473_v33 = vpack.c.bf16 %v180_v29, %v179_v28  ;;  %v181_v34 = vld [vmem:[#allocation5 + $0x60] sm:$0xff]  ;;  %v182_v35 = vld [vmem:[#allocation5 + $0x68] sm:$0xff]  ;;  %v1494_v36 = vpack.c.bf16 %v271_v32, %v270_v31  ;;  %v272_v37 = vld [vmem:[#allocation7 + $0x50] sm:$0xff]  ;;  %p1881_p6 = pnand %p1880_p5, %p1874_p2 }
  0xbc   :  { %1463 = vmatprep.subr.bf16.mxu0 %v2080_v0  ;;  %v273_v38 = vld [vmem:[#allocation7 + $0x58] sm:$0xff]  ;;  %v1476_v39 = vpack.c.bf16 %v182_v35, %v181_v34  ;;  %v183_v40 = vld [vmem:[#allocation5 + $0x70] sm:$0xff]  ;;  %v274_v43 = vld [vmem:[#allocation7 + $0x60] sm:$0xff] }
  0xbd   :  { %1486 = vmatpush3.bf16.msra.mxu1 %v1485_v18  ;;  %v184_v41 = vld [vmem:[#allocation5 + $0x78] sm:$0xff]  ;;  %v1497_v42 = vpack.c.bf16 %v273_v38, %v272_v37  ;;  %v275_v44 = vld [vmem:[#allocation7 + $0x68] sm:$0xff]  ;;  %v276_v48 = vld [vmem:[#allocation7 + $0x70] sm:$0xff] }
  0xbe   :  { %1487 = vmatprep.subr.bf16.mxu1 %v2080_v0  ;;  %v1479_v45 = vpack.c.bf16 %v184_v41, %v183_v40  ;;  %v1500_v46 = vpack.c.bf16 %v275_v44, %v274_v43  ;;  %v168_v47 = vld [vmem:[#allocation2] sm:$0xff]  ;;  %v355_v51 = vld [vmem:[#allocation8] sm:$0xff]  ;;  %v356_v52 = vld [vmem:[#allocation8 + $0x8] sm:$0xff] }
  0xbf   :  { %1465 = vmatpush3.bf16.msra.mxu0 %v1464_v14  ;;  %v277_v49 = vld [vmem:[#allocation7 + $0x78] sm:$0xff]  ;;  %v357_v53 = vld [vmem:[#allocation8 + $0x10] sm:$0xff]  ;;  %v1506_v54 = vpack.c.bf16 %v356_v52, %v355_v51  ;;  %v359_v57 = vld [vmem:[#allocation8 + $0x20] sm:$0xff] }
  0xc0   :  { %1466 = vmatprep.subr.bf16.mxu0 %v2080_v0  ;;  %v1503_v50 = vpack.c.bf16 %v277_v49, %v276_v48  ;;  %v358_v55 = vld [vmem:[#allocation8 + $0x18] sm:$0xff]  ;;  %v360_v58 = vld [vmem:[#allocation8 + $0x28] sm:$0xff]  ;;  %v361_v60 = vld [vmem:[#allocation8 + $0x30] sm:$0xff] }
  0xc1   :  { %1489 = vmatpush3.bf16.msra.mxu1 %v1488_v24  ;;  %v1509_v56 = vpack.c.bf16 %v358_v55, %v357_v53  ;;  %v1512_v59 = vpack.c.bf16 %v360_v58, %v359_v57  ;;  %v362_v61 = vld [vmem:[#allocation8 + $0x38] sm:$0xff]  ;;  %v363_v63 = vld [vmem:[#allocation8 + $0x40] sm:$0xff]  ;;  %v364_v2 = vld [vmem:[#allocation8 + $0x48] sm:$0xff] }
  0xc2   :  { %1490 = vmatprep.subr.bf16.mxu1 %v2080_v0  ;;  %v1515_v62 = vpack.c.bf16 %v362_v61, %v361_v60  ;;  %v1518_v3 = vpack.c.bf16 %v364_v2, %v363_v63  ;;  %v365_v4 = vld [vmem:[#allocation8 + $0x50] sm:$0xff]  ;;  %v366_v5 = vld [vmem:[#allocation8 + $0x58] sm:$0xff]  ;;  %v367_v7 = vld [vmem:[#allocation8 + $0x60] sm:$0xff] }
  0xc3   :  { %1468 = vmatpush3.bf16.msra.mxu0 %v1467_v21  ;;  %v1521_v6 = vpack.c.bf16 %v366_v5, %v365_v4  ;;  %v368_v8 = vld [vmem:[#allocation8 + $0x68] sm:$0xff]  ;;  %v1032_v10 = vld [vmem:[%s2522_s9] ss:$0 sm:$0xff]  ;;  %v369_v15 = vld [vmem:[#allocation8 + $0x70] sm:$0xff] }
  0xc4   :  { %1469 = vmatprep.subr.bf16.mxu0 %v2080_v0  ;;  %v1524_v9 = vpack.c.bf16 %v368_v8, %v367_v7  ;;  %v370_v16 = vld [vmem:[#allocation8 + $0x78] sm:$0xff]  ;;  %v448_v18 = vld [vmem:[#allocation10] sm:$0xff]  ;;  %v449_v19 = vld [vmem:[#allocation10 + $0x8] sm:$0xff] }
  0xc5   :  { %1492 = vmatpush3.bf16.msra.mxu1 %v1491_v30  ;;  %v1527_v17 = vpack.c.bf16 %v370_v16, %v369_v15  ;;  %v450_v20 = vld [vmem:[#allocation10 + $0x10] sm:$0xff]  ;;  %v1530_v21 = vpack.c.bf16 %v449_v19, %v448_v18  ;;  %v451_v22 = vld [vmem:[#allocation10 + $0x18] sm:$0xff]  ;;  %v452_v24 = vld [vmem:[#allocation10 + $0x20] sm:$0xff] }
  0xc6   :  { %1493 = vmatprep.subr.bf16.mxu1 %v2080_v0  ;;  %v1533_v23 = vpack.c.bf16 %v451_v22, %v450_v20  ;;  %v453_v25 = vld [vmem:[#allocation10 + $0x28] sm:$0xff]  ;;  %v455_v28 = vld [vmem:[#allocation10 + $0x38] sm:$0xff]  ;;  %v456_v30 = vld [vmem:[#allocation10 + $0x40] sm:$0xff] }
  0xc7   :  { %1471 = vmatpush3.bf16.msra.mxu0 %v1470_v27  ;;  %v1536_v26 = vpack.c.bf16 %v453_v25, %v452_v24  ;;  %v454_v27 = vld [vmem:[#allocation10 + $0x30] sm:$0xff]  ;;  %v457_v31 = vld [vmem:[#allocation10 + $0x48] sm:$0xff]  ;;  %v459_v34 = vld [vmem:[#allocation10 + $0x58] sm:$0xff] }
  0xc8   :  { %1472 = vmatprep.subr.bf16.mxu0 %v2080_v0  ;;  %v1539_v29 = vpack.c.bf16 %v455_v28, %v454_v27  ;;  %v1542_v32 = vpack.c.bf16 %v457_v31, %v456_v30  ;;  %v461_v37 = vld [vmem:[#allocation10 + $0x68] sm:$0xff]  ;;  %v462_v44 = vld [vmem:[#allocation10 + $0x70] sm:$0xff]  ;;  %v544_v51 = vld [vmem:[#allocation11 + $0x18] sm:$0xff] }
  0xc9   :  { %1495 = vmatpush3.bf16.msra.mxu1 %v1494_v36  ;;  %v460_v36 = vld [vmem:[#allocation10 + $0x60] sm:$0xff]  ;;  %v542_v48 = vld [vmem:[#allocation11 + $0x8] sm:$0xff]  ;;  %v543_v49 = vld [vmem:[#allocation11 + $0x10] sm:$0xff] }
  0xca   :  { %1496 = vmatprep.subr.bf16.mxu1 %v2080_v0  ;;  %v1548_v38 = vpack.c.bf16 %v461_v37, %v460_v36  ;;  %v1557_v52 = vpack.c.bf16 %v544_v51, %v543_v49  ;;  %v545_v53 = vld [vmem:[#allocation11 + $0x20] sm:$0xff]  ;;  %v548_v57 = vld [vmem:[#allocation11 + $0x38] sm:$0xff]  ;;  %v550_v60 = vld [vmem:[#allocation11 + $0x48] sm:$0xff] }
  0xcb   :  { %1474 = vmatpush3.bf16.msra.mxu0 %v1473_v33  ;;  %v458_v33 = vld [vmem:[#allocation10 + $0x50] sm:$0xff]  ;;  %v552_v63 = vld [vmem:[#allocation11 + $0x58] sm:$0xff]  ;;  %v554_v4 = vld [vmem:[#allocation11 + $0x68] sm:$0xff] }
  0xcc   :  { %1475 = vmatprep.subr.bf16.mxu0 %v2080_v0  ;;  %v1545_v35 = vpack.c.bf16 %v459_v34, %v458_v33  ;;  %v635_v15 = vld [vmem:[#allocation13 + $0x8] sm:$0xff]  ;;  %v636_v16 = vld [vmem:[#allocation13 + $0x10] sm:$0xff]  ;;  %v637_v18 = vld [vmem:[#allocation13 + $0x18] sm:$0xff] }
  0xcd   :  { %1498 = vmatpush3.bf16.msra.mxu1 %v1497_v42  ;;  %v1581_v19 = vpack.c.bf16 %v637_v18, %v636_v16  ;;  %v638_v20 = vld [vmem:[#allocation13 + $0x20] sm:$0xff]  ;;  %v641_v24 = vld [vmem:[#allocation13 + $0x38] sm:$0xff]  ;;  %v643_v27 = vld [vmem:[#allocation13 + $0x48] sm:$0xff] }
  0xce   :  { %1499 = vmatprep.subr.bf16.mxu1 %v2080_v0  ;;  %v645_v30 = vld [vmem:[#allocation13 + $0x58] sm:$0xff]  ;;  %v647_v33 = vld [vmem:[#allocation13 + $0x68] sm:$0xff]  ;;  %v731_v49 = vld [vmem:[#allocation14 + $0x20] sm:$0xff] }
  0xcf   :  { %1477 = vmatpush3.bf16.msra.mxu0 %v1476_v39  ;;  %v1033_v39 = vld [vmem:[%s2522_s9 + $0x1] ss:$0 sm:$0xff]  ;;  %v824_v16 = vld [vmem:[#allocation16 + $0x20] sm:$0xff] }
  0xd0   :  { %1478 = vmatprep.subr.bf16.mxu0 %v2080_v0 }
  0xd1   :  { %1501 = vmatpush3.bf16.msra.mxu1 %v1500_v46 }
  0xd2   :  { %1502 = vmatprep.subr.bf16.mxu1 %v2080_v0 }
  0xd3   :  { %1480 = vmatpush3.bf16.msra.mxu0 %v1479_v45  ;;  %v463_v45 = vld [vmem:[#allocation10 + $0x78] sm:$0xff] }
  0xd4   :  { %1505 = vmatprep.subr.bf16.mxu0 %v2080_v0  ;;  %v1551_v46 = vpack.c.bf16 %v463_v45, %v462_v44  ;;  %v728_v44 = vld [vmem:[#allocation14 + $0x8] sm:$0xff]  ;;  %v729_v45 = vld [vmem:[#allocation14 + $0x10] sm:$0xff] }
  0xd5   :  { %1504 = vmatpush3.bf16.msra.mxu1 %v1503_v50 }
  0xd6   :  { %1210 = vmatmul.mubr.f32.vlgmr.msra.gmra.mrb[0].mxu0 %v168_v47  ;;  %1529 = vmatprep.subr.bf16.mxu1 %v2080_v0  ;;  %v541_v47 = vld [vmem:[#allocation11] sm:$0xff] }
  0xd7   :  { %1279 = vmatprep.mubr.msk.f32.mxu0 %vm2081_vm0, %v2082_v1  ;;  %1507 = vmatpush3.bf16.msra.mxu0 %v1506_v54  ;;  %v1554_v50 = vpack.c.bf16 %v542_v48, %v541_v47  ;;  %v546_v54 = vld [vmem:[#allocation11 + $0x28] sm:$0xff]  ;;  %v730_v47 = vld [vmem:[#allocation14 + $0x18] sm:$0xff] }
  0xd8   :  { %1508 = vmatprep.subr.bf16.mxu0 %v2080_v0  ;;  %v1560_v55 = vpack.c.bf16 %v546_v54, %v545_v53  ;;  %v1605_v48 = vpack.c.bf16 %v730_v47, %v729_v45  ;;  %v734_v53 = vld [vmem:[#allocation14 + $0x38] sm:$0xff] }
  0xdb   :  { %1510 = vmatpush3.bf16.msra.mxu0 %v1509_v56  ;;  %v547_v56 = vld [vmem:[#allocation11 + $0x30] sm:$0xff] }
  0xdc   :  { %1511 = vmatprep.subr.bf16.mxu0 %v2080_v0  ;;  %v1563_v58 = vpack.c.bf16 %v548_v57, %v547_v56  ;;  %v736_v56 = vld [vmem:[#allocation14 + $0x48] sm:$0xff] }
  0xdf   :  { %1513 = vmatpush3.bf16.msra.mxu0 %v1512_v59  ;;  %v549_v59 = vld [vmem:[#allocation11 + $0x40] sm:$0xff] }
  0xe0   :  { %1514 = vmatprep.subr.bf16.mxu0 %v2080_v0  ;;  %v1566_v61 = vpack.c.bf16 %v550_v60, %v549_v59  ;;  %v738_v59 = vld [vmem:[#allocation14 + $0x58] sm:$0xff] }
  0xe3   :  { %1516 = vmatpush3.bf16.msra.mxu0 %v1515_v62  ;;  %v551_v62 = vld [vmem:[#allocation11 + $0x50] sm:$0xff] }
  0xe4   :  { %1517 = vmatprep.subr.bf16.mxu0 %v2080_v0  ;;  %v1569_v2 = vpack.c.bf16 %v552_v63, %v551_v62  ;;  %v740_v62 = vld [vmem:[#allocation14 + $0x68] sm:$0xff] }
  0xe7   :  { %1519 = vmatpush3.bf16.msra.mxu0 %v1518_v3  ;;  %v553_v3 = vld [vmem:[#allocation11 + $0x60] sm:$0xff] }
  0xe8   :  { %1520 = vmatprep.subr.bf16.mxu0 %v2080_v0  ;;  %v1572_v5 = vpack.c.bf16 %v554_v4, %v553_v3 }
  0xeb   :  { %1522 = vmatpush3.bf16.msra.mxu0 %v1521_v6  ;;  %v1034_v6 = vld [vmem:[%s2522_s9 + $0x2] ss:$0 sm:$0xff] }
  0xec   :  { %1523 = vmatprep.subr.bf16.mxu0 %v2080_v0 }
  0xef   :  { %1525 = vmatpush3.bf16.msra.mxu0 %v1524_v9 }
  0xf0   :  { %1526 = vmatprep.subr.bf16.mxu0 %v2080_v0 }
  0xf3   :  { %1528 = vmatpush3.bf16.msra.mxu0 %v1527_v17 }
  0xf4   :  { %1553 = vmatprep.subr.bf16.mxu0 %v2080_v0 }
 0x1a9   :  { %v256_v11 = vpop.f32.mrb[0].mxu0 }
 0x1aa   :  { %v257_v12 = vadd.f32 %v1032_v10, %v256_v11  ;;  %v1211_v13 = vpop.f32.mrb[1].mxu0  ;;  %v555_v11 = vld [vmem:[#allocation11 + $0x70] sm:$0xff] }
 0x1ac   :  { %v260_v14 = vmax.f32 %v257_v12, 0.0  ;;  %v556_v12 = vld [vmem:[#allocation11 + $0x78] sm:$0xff] }
 0x1ad   :  { %v1575_v13 = vpack.c.bf16 %v556_v12, %v555_v11  ;;  %v821_v11 = vld [vmem:[#allocation16 + $0x8] sm:$0xff]  ;;  %v822_v12 = vld [vmem:[#allocation16 + $0x10] sm:$0xff] }
 0x1ae   :  { %261 = vst [vmem:[#allocation17] sm:$0xff] %v260_v14  ;;  %1245 = vmatmul.mubr.f32.vlgmr.msra.gmra.mrb[0].mxu1 %v260_v14  ;;  %v634_v14 = vld [vmem:[#allocation13] sm:$0xff] }
 0x1af   :  { %1314 = vmatprep.mubr.msk.f32.mxu1 %vm2081_vm0, %v2082_v1  ;;  %1531 = vmatpush3.bf16.msra.mxu1 %v1530_v21  ;;  %v1578_v17 = vpack.c.bf16 %v635_v15, %v634_v14  ;;  %v639_v21 = vld [vmem:[#allocation13 + $0x28] sm:$0xff]  ;;  %v823_v14 = vld [vmem:[#allocation16 + $0x18] sm:$0xff] }
 0x1b0   :  { %1532 = vmatprep.subr.bf16.mxu1 %v2080_v0  ;;  %v1584_v22 = vpack.c.bf16 %v639_v21, %v638_v20  ;;  %v1629_v15 = vpack.c.bf16 %v823_v14, %v822_v12  ;;  %v828_v21 = vld [vmem:[#allocation16 + $0x40] sm:$0xff] }
 0x1b3   :  { %1534 = vmatpush3.bf16.msra.mxu1 %v1533_v23  ;;  %v640_v23 = vld [vmem:[#allocation13 + $0x30] sm:$0xff] }
 0x1b4   :  { %1535 = vmatprep.subr.bf16.mxu1 %v2080_v0  ;;  %v1587_v25 = vpack.c.bf16 %v641_v24, %v640_v23  ;;  %v830_v24 = vld [vmem:[#allocation16 + $0x50] sm:$0xff] }
 0x1b7   :  { %1537 = vmatpush3.bf16.msra.mxu1 %v1536_v26  ;;  %v642_v26 = vld [vmem:[#allocation13 + $0x40] sm:$0xff] }
 0x1b8   :  { %1538 = vmatprep.subr.bf16.mxu1 %v2080_v0  ;;  %v1590_v28 = vpack.c.bf16 %v643_v27, %v642_v26  ;;  %v832_v27 = vld [vmem:[#allocation16 + $0x60] sm:$0xff] }
 0x1bb   :  { %1540 = vmatpush3.bf16.msra.mxu1 %v1539_v29  ;;  %v644_v29 = vld [vmem:[#allocation13 + $0x50] sm:$0xff] }
 0x1bc   :  { %1541 = vmatprep.subr.bf16.mxu1 %v2080_v0  ;;  %v1593_v31 = vpack.c.bf16 %v645_v30, %v644_v29  ;;  %v1037_v30 = vld [vmem:[%s2522_s9 + $0x5] ss:$0 sm:$0xff] }
 0x1bf   :  { %1543 = vmatpush3.bf16.msra.mxu1 %v1542_v32  ;;  %v646_v32 = vld [vmem:[#allocation13 + $0x60] sm:$0xff] }
 0x1c0   :  { %1544 = vmatprep.subr.bf16.mxu1 %v2080_v0  ;;  %v1596_v34 = vpack.c.bf16 %v647_v33, %v646_v32 }
 0x1c3   :  { %1546 = vmatpush3.bf16.msra.mxu1 %v1545_v35  ;;  %v1035_v35 = vld [vmem:[%s2522_s9 + $0x3] ss:$0 sm:$0xff] }
 0x1c4   :  { %1547 = vmatprep.subr.bf16.mxu1 %v2080_v0 }
 0x1c7   :  { %1549 = vmatpush3.bf16.msra.mxu1 %v1548_v38 }
 0x1c8   :  { %1550 = vmatprep.subr.bf16.mxu1 %v2080_v0 }
 0x1cb   :  { %1552 = vmatpush3.bf16.msra.mxu1 %v1551_v46 }
 0x1cc   :  { %1577 = vmatprep.subr.bf16.mxu1 %v2080_v0 }
 0x281   :  { %v349_v40 = vpop.f32.mrb[0].mxu1 }
 0x282   :  { %v350_v41 = vadd.f32 %v1033_v39, %v349_v40  ;;  %v1246_v42 = vpop.f32.mrb[1].mxu1  ;;  %v648_v40 = vld [vmem:[#allocation13 + $0x70] sm:$0xff] }
 0x284   :  { %v353_v43 = vmax.f32 %v350_v41, 0.0  ;;  %v649_v41 = vld [vmem:[#allocation13 + $0x78] sm:$0xff] }
 0x285   :  { %v1599_v42 = vpack.c.bf16 %v649_v41, %v648_v40 }
 0x286   :  { %354 = vst [vmem:[#allocation18] sm:$0xff] %v353_v43  ;;  %1280 = vmatmul.mubr.f32.vlgmr.msra.gmra.mrb[2].mxu0 %v353_v43  ;;  %v727_v43 = vld [vmem:[#allocation14] sm:$0xff] }
 0x287   :  { %1349 = vmatprep.mubr.msk.f32.mxu0 %vm2081_vm0, %v2082_v1  ;;  %1555 = vmatpush3.bf16.msra.mxu0 %v1554_v50  ;;  %v1602_v46 = vpack.c.bf16 %v728_v44, %v727_v43  ;;  %v732_v50 = vld [vmem:[#allocation14 + $0x28] sm:$0xff] }
 0x288   :  { %1556 = vmatprep.subr.bf16.mxu0 %v2080_v0  ;;  %v1608_v51 = vpack.c.bf16 %v732_v50, %v731_v49 }
 0x28b   :  { %1558 = vmatpush3.bf16.msra.mxu0 %v1557_v52  ;;  %v733_v52 = vld [vmem:[#allocation14 + $0x30] sm:$0xff] }
 0x28c   :  { %1559 = vmatprep.subr.bf16.mxu0 %v2080_v0  ;;  %v1611_v54 = vpack.c.bf16 %v734_v53, %v733_v52 }
 0x28f   :  { %1561 = vmatpush3.bf16.msra.mxu0 %v1560_v55  ;;  %v735_v55 = vld [vmem:[#allocation14 + $0x40] sm:$0xff] }
 0x290   :  { %1562 = vmatprep.subr.bf16.mxu0 %v2080_v0  ;;  %v1614_v57 = vpack.c.bf16 %v736_v56, %v735_v55 }
 0x293   :  { %1564 = vmatpush3.bf16.msra.mxu0 %v1563_v58  ;;  %v737_v58 = vld [vmem:[#allocation14 + $0x50] sm:$0xff] }
 0x294   :  { %1565 = vmatprep.subr.bf16.mxu0 %v2080_v0  ;;  %v1617_v60 = vpack.c.bf16 %v738_v59, %v737_v58 }
 0x297   :  { %1567 = vmatpush3.bf16.msra.mxu0 %v1566_v61  ;;  %v739_v61 = vld [vmem:[#allocation14 + $0x60] sm:$0xff] }
 0x298   :  { %1568 = vmatprep.subr.bf16.mxu0 %v2080_v0  ;;  %v1620_v63 = vpack.c.bf16 %v740_v62, %v739_v61 }
 0x29b   :  { %1570 = vmatpush3.bf16.msra.mxu0 %v1569_v2  ;;  %v1036_v2 = vld [vmem:[%s2522_s9 + $0x4] ss:$0 sm:$0xff] }
 0x29c   :  { %1571 = vmatprep.subr.bf16.mxu0 %v2080_v0 }
 0x29f   :  { %1573 = vmatpush3.bf16.msra.mxu0 %v1572_v5 }
 0x2a0   :  { %1574 = vmatprep.subr.bf16.mxu0 %v2080_v0 }
 0x2a3   :  { %1576 = vmatpush3.bf16.msra.mxu0 %v1575_v13 }
 0x2a4   :  { %1601 = vmatprep.subr.bf16.mxu0 %v2080_v0 }
 0x359   :  { %v442_v7 = vpop.f32.mrb[2].mxu0 }
 0x35a   :  { %v443_v8 = vadd.f32 %v1034_v6, %v442_v7  ;;  %v1281_v9 = vpop.f32.mrb[3].mxu0  ;;  %v741_v7 = vld [vmem:[#allocation14 + $0x70] sm:$0xff] }
 0x35c   :  { %v446_v10 = vmax.f32 %v443_v8, 0.0  ;;  %v742_v8 = vld [vmem:[#allocation14 + $0x78] sm:$0xff] }
 0x35d   :  { %v1623_v9 = vpack.c.bf16 %v742_v8, %v741_v7 }
 0x35e   :  { %447 = vst [vmem:[#allocation20] sm:$0xff] %v446_v10  ;;  %1315 = vmatmul.mubr.f32.vlgmr.msra.gmra.mrb[2].mxu1 %v446_v10  ;;  %v820_v10 = vld [vmem:[#allocation16] sm:$0xff] }
 0x35f   :  { %1384 = vmatprep.mubr.msk.f32.mxu1 %vm2081_vm0, %v2082_v1  ;;  %1579 = vmatpush3.bf16.msra.mxu1 %v1578_v17  ;;  %v1626_v13 = vpack.c.bf16 %v821_v11, %v820_v10  ;;  %v825_v17 = vld [vmem:[#allocation16 + $0x28] sm:$0xff] }
 0x360   :  { %1580 = vmatprep.subr.bf16.mxu1 %v2080_v0  ;;  %v1632_v18 = vpack.c.bf16 %v825_v17, %v824_v16 }
 0x363   :  { %1582 = vmatpush3.bf16.msra.mxu1 %v1581_v19  ;;  %v827_v19 = vld [vmem:[#allocation16 + $0x38] sm:$0xff] }
 0x364   :  { %1583 = vmatprep.subr.bf16.mxu1 %v2080_v0 }
 0x367   :  { %1585 = vmatpush3.bf16.msra.mxu1 %v1584_v22  ;;  %v829_v22 = vld [vmem:[#allocation16 + $0x48] sm:$0xff] }
 0x368   :  { %1586 = vmatprep.subr.bf16.mxu1 %v2080_v0  ;;  %v1638_v23 = vpack.c.bf16 %v829_v22, %v828_v21 }
 0x36b   :  { %1588 = vmatpush3.bf16.msra.mxu1 %v1587_v25  ;;  %v831_v25 = vld [vmem:[#allocation16 + $0x58] sm:$0xff] }
 0x36c   :  { %1589 = vmatprep.subr.bf16.mxu1 %v2080_v0  ;;  %v1641_v26 = vpack.c.bf16 %v831_v25, %v830_v24 }
 0x36f   :  { %1591 = vmatpush3.bf16.msra.mxu1 %v1590_v28  ;;  %v833_v28 = vld [vmem:[#allocation16 + $0x68] sm:$0xff] }
 0x370   :  { %1592 = vmatprep.subr.bf16.mxu1 %v2080_v0  ;;  %v1644_v29 = vpack.c.bf16 %v833_v28, %v832_v27 }
 0x373   :  { %1594 = vmatpush3.bf16.msra.mxu1 %v1593_v31 }
 0x374   :  { %1595 = vmatprep.subr.bf16.mxu1 %v2080_v0 }
 0x377   :  { %1597 = vmatpush3.bf16.msra.mxu1 %v1596_v34 }
 0x378   :  { %1598 = vmatprep.subr.bf16.mxu1 %v2080_v0 }
 0x37b   :  { %1600 = vmatpush3.bf16.msra.mxu1 %v1599_v42 }
 0x37c   :  { %1625 = vmatprep.subr.bf16.mxu1 %v2080_v0 }
 0x431   :  { %v535_v36 = vpop.f32.mrb[2].mxu1 }
 0x432   :  { %v536_v37 = vadd.f32 %v1035_v35, %v535_v36  ;;  %v1316_v38 = vpop.f32.mrb[3].mxu1  ;;  %v834_v35 = vld [vmem:[#allocation16 + $0x70] sm:$0xff]  ;;  %v835_v36 = vld [vmem:[#allocation16 + $0x78] sm:$0xff] }
 0x433   :  { %v1038_v38 = vld [vmem:[%s2522_s9 + $0x6] ss:$0 sm:$0xff] }
 0x434   :  { %v539_v39 = vmax.f32 %v536_v37, 0.0  ;;  %v1647_v37 = vpack.c.bf16 %v835_v36, %v834_v35 }
 0x436   :  { %540 = vst [vmem:[#allocation21] sm:$0xff] %v539_v39  ;;  %1350 = vmatmul.mubr.f32.vlgmr.msra.gmra.mrb[4].mxu0 %v539_v39 }
 0x437   :  { %1419 = vmatprep.mubr.msk.f32.mxu0 %vm2081_vm0, %v2082_v1  ;;  %1603 = vmatpush3.bf16.msra.mxu0 %v1602_v46 }
 0x438   :  { %1604 = vmatprep.subr.bf16.mxu0 %v2080_v0 }
 0x43b   :  { %1606 = vmatpush3.bf16.msra.mxu0 %v1605_v48 }
 0x43c   :  { %1607 = vmatprep.subr.bf16.mxu0 %v2080_v0 }
 0x43f   :  { %1609 = vmatpush3.bf16.msra.mxu0 %v1608_v51 }
 0x440   :  { %1610 = vmatprep.subr.bf16.mxu0 %v2080_v0 }
 0x443   :  { %1612 = vmatpush3.bf16.msra.mxu0 %v1611_v54 }
 0x444   :  { %1613 = vmatprep.subr.bf16.mxu0 %v2080_v0 }
 0x447   :  { %1615 = vmatpush3.bf16.msra.mxu0 %v1614_v57 }
 0x448   :  { %1616 = vmatprep.subr.bf16.mxu0 %v2080_v0 }
 0x44b   :  { %1618 = vmatpush3.bf16.msra.mxu0 %v1617_v60 }
 0x44c   :  { %1619 = vmatprep.subr.bf16.mxu0 %v2080_v0 }
 0x44f   :  { %1621 = vmatpush3.bf16.msra.mxu0 %v1620_v63 }
 0x450   :  { %1622 = vmatprep.subr.bf16.mxu0 %v2080_v0 }
 0x453   :  { %1624 = vmatpush3.bf16.msra.mxu0 %v1623_v9 }
 0x509   :  { %v628_v3 = vpop.f32.mrb[4].mxu0 }
 0x50a   :  { %v629_v4 = vadd.f32 %v1036_v2, %v628_v3  ;;  %v1351_v5 = vpop.f32.mrb[5].mxu0 }
 0x50c   :  { %v632_v6 = vmax.f32 %v629_v4, 0.0 }
 0x50e   :  { %633 = vst [vmem:[#allocation23] sm:$0xff] %v632_v6  ;;  %1385 = vmatmul.mubr.f32.vlgmr.msra.gmra.mrb[4].mxu1 %v632_v6 }
 0x50f   :  { %1454 = vmatprep.mubr.msk.f32.mxu1 %vm2081_vm0, %v2082_v1  ;;  %1627 = vmatpush3.bf16.msra.mxu1 %v1626_v13  ;;  %v826_v1 = vld [vmem:[#allocation16 + $0x30] sm:$0xff] }
 0x510   :  { %1628 = vmatprep.subr.bf16.mxu1 %v2080_v0  ;;  %v1635_v20 = vpack.c.bf16 %v827_v19, %v826_v1 }
 0x513   :  { %1630 = vmatpush3.bf16.msra.mxu1 %v1629_v15 }
 0x514   :  { %1631 = vmatprep.subr.bf16.mxu1 %v2080_v0 }
 0x517   :  { %1633 = vmatpush3.bf16.msra.mxu1 %v1632_v18 }
 0x518   :  { %1634 = vmatprep.subr.bf16.mxu1 %v2080_v0 }
 0x51b   :  { %1636 = vmatpush3.bf16.msra.mxu1 %v1635_v20 }
 0x51c   :  { %1637 = vmatprep.subr.bf16.mxu1 %v2080_v0 }
 0x51f   :  { %1639 = vmatpush3.bf16.msra.mxu1 %v1638_v23 }
 0x520   :  { %1640 = vmatprep.subr.bf16.mxu1 %v2080_v0 }
 0x523   :  { %1642 = vmatpush3.bf16.msra.mxu1 %v1641_v26 }
 0x524   :  { %1643 = vmatprep.subr.bf16.mxu1 %v2080_v0 }
 0x527   :  { %1645 = vmatpush3.bf16.msra.mxu1 %v1644_v29 }
 0x528   :  { %1646 = vmatprep.subr.bf16.mxu1 %v2080_v0 }
 0x52b   :  { %1648 = vmatpush3.bf16.msra.mxu1 %v1647_v37 }
 0x5e1   :  { %v721_v31 = vpop.f32.mrb[4].mxu1 }
 0x5e2   :  { %v722_v32 = vadd.f32 %v1037_v30, %v721_v31  ;;  %v1386_v33 = vpop.f32.mrb[5].mxu1 }
 0x5e4   :  { %v725_v34 = vmax.f32 %v722_v32, 0.0 }
 0x5e6   :  { %726 = vst [vmem:[#allocation24] sm:$0xff] %v725_v34  ;;  %1420 = vmatmul.mubr.f32.vlgmr.msra.gmra.mrb[6].mxu0 %v725_v34 }
 0x6b9   :  { %v814_v39 = vpop.f32.mrb[6].mxu0 }
 0x6ba   :  { %v815_v0 = vadd.f32 %v1038_v38, %v814_v39  ;;  %v1421_v40 = vpop.f32.mrb[7].mxu0 }
 0x6bc   :  { %v818_v41 = vmax.f32 %v815_v0, 0.0 }
 0x6be   :  { %819 = vst [vmem:[#allocation26] sm:$0xff] %v818_v41  ;;  %1455 = vmatmul.mubr.f32.vlgmr.msra.gmra.mrb[6].mxu1 %v818_v41 }
 0x6bf   :  { %1884 = shalt.err (!%p1881_p6)
}
 0x6c0   :  { %s1885_s19 = scalar_lea.hbm %s2524_s11, 128 }
 0x6c1   :  { %p1886_p7 = scmp.ne.s32.totalorder %s2524_s11, %s1885_s19  ;;  %p1889_p8 = scmp.lt.u32.totalorder %s1885_s19, %s2524_s11 }
 0x6c3   :  { %p1891_p9 = pnand %p1889_p8, %p1886_p7 }
 0x6c5   :  { %1894 = shalt.err (!%p1891_p9)
}
 0x6c6   :  { %937 = dma.vmem_to_hbm [thread:$0]  %s935_s0, 128, %s2524_s11, [#allocation19]  }
 0x6c7   :  { %s1895_s22 = scalar_lea.vmem %s955_s30, 128  ;;  %p1900_p11 = scmp.lt.s32.totalorder %s955_s30, %s955_s30 }
 0x6c8   :  { %p1896_p10 = scmp.ne.s32.totalorder %s955_s30, %s1895_s22  ;;  %p1901_p12 = scmp.lt.s32.totalorder %s1895_s22, %s1895_s22 }
 0x6ca   :  { %p1902_p13 = por %p1901_p12, %p1900_p11 }
 0x6cc   :  { %p1903_p0 = pnand %p1902_p13, %p1896_p10 }
 0x6ce   :  { %1906 = shalt.err (!%p1903_p0)
}
 0x6cf   :  { %s1907_s23 = scalar_lea.hbm %s2526_s13, 128 }
 0x6d0   :  { %p1908_p1 = scmp.ne.s32.totalorder %s2526_s13, %s1907_s23  ;;  %p1911_p2 = scmp.lt.u32.totalorder %s1907_s23, %s2526_s13 }
 0x6d2   :  { %p1913_p3 = pnand %p1911_p2, %p1908_p1 }
 0x6d4   :  { %1916 = shalt.err (!%p1913_p3)
}
 0x6d5   :  { %957 = dma.vmem_to_hbm [thread:$0]  %s955_s30, 128, %s2526_s13, [#allocation22]  }
 0x6d6   :  { %s2085_s1 = smov [#allocation24]   ;;  %s2086_s0 = smov [#allocation17]  }
 0x6d7   :  { %s974_s24 = sshll.u32 %s2085_s1, 4  ;;  %s924_s29 = sshll.u32 %s2086_s0, 4  ;;  %s975_s24 = int_to_ptr.vmem [resolvable:$true] %s974_s24  ;;  %s925_s29 = int_to_ptr.vmem [resolvable:$true] %s924_s29 }
 0x6d8   :  { %s1917_s2 = scalar_lea.vmem %s975_s24, 128  ;;  %p1922_p5 = scmp.lt.s32.totalorder %s975_s24, %s975_s24 }
 0x6d9   :  { %p1918_p4 = scmp.ne.s32.totalorder %s975_s24, %s1917_s2  ;;  %p1923_p6 = scmp.lt.s32.totalorder %s1917_s2, %s1917_s2 }
 0x6db   :  { %p1924_p7 = por %p1923_p6, %p1922_p5 }
 0x6dd   :  { %p1925_p8 = pnand %p1924_p7, %p1918_p4 }
 0x6df   :  { %1928 = shalt.err (!%p1925_p8)
}
 0x6e0   :  { %s1929_s19 = scalar_lea.hbm %s2528_s15, 128 }
 0x6e1   :  { %p1930_p9 = scmp.ne.s32.totalorder %s2528_s15, %s1929_s19  ;;  %p1933_p10 = scmp.lt.u32.totalorder %s1929_s19, %s2528_s15 }
 0x6e3   :  { %p1935_p11 = pnand %p1933_p10, %p1930_p9 }
 0x6e5   :  { %1938 = shalt.err (!%p1935_p11)
}
 0x6e6   :  { %977 = dma.vmem_to_hbm [thread:$0]  %s975_s24, 128, %s2528_s15, [#allocation25]  }
 0x6e7   :  { %s1939_s21 = scalar_lea.vmem %s925_s29, 128  ;;  %p1944_p13 = scmp.lt.s32.totalorder %s925_s29, %s925_s29 }
 0x6e8   :  { %p1940_p12 = scmp.ne.s32.totalorder %s925_s29, %s1939_s21  ;;  %p1945_p0 = scmp.lt.s32.totalorder %s1939_s21, %s1939_s21 }
 0x6ea   :  { %p1946_p1 = por %p1945_p0, %p1944_p13 }
 0x6ec   :  { %p1947_p2 = pnand %p1946_p1, %p1940_p12 }
 0x6ee   :  { %1950 = shalt.err (!%p1947_p2)
}
 0x6ef   :  { %s1951_s28 = scalar_lea.hbm %s2523_s10, 128 }
 0x6f0   :  { %p1952_p3 = scmp.ne.s32.totalorder %s2523_s10, %s1951_s28  ;;  %p1955_p4 = scmp.lt.u32.totalorder %s1951_s28, %s2523_s10 }
 0x6f2   :  { %p1957_p5 = pnand %p1955_p4, %p1952_p3 }
 0x6f4   :  { %1960 = shalt.err (!%p1957_p5)
}
 0x6f5   :  { %927 = dma.vmem_to_hbm [thread:$0]  %s925_s29, 128, %s2523_s10, [#allocation4]  }
 0x6f6   :  { %s2087_s4 = smov [#allocation20]   ;;  %s2088_s5 = smov [#allocation23]  }
 0x6f7   :  { %s944_s11 = sshll.u32 %s2087_s4, 4  ;;  %s964_s1 = sshll.u32 %s2088_s5, 4  ;;  %s945_s11 = int_to_ptr.vmem [resolvable:$true] %s944_s11  ;;  %s965_s1 = int_to_ptr.vmem [resolvable:$true] %s964_s1 }
 0x6f8   :  { %s1961_s24 = scalar_lea.vmem %s945_s11, 128  ;;  %p1966_p7 = scmp.lt.s32.totalorder %s945_s11, %s945_s11 }
 0x6f9   :  { %p1962_p6 = scmp.ne.s32.totalorder %s945_s11, %s1961_s24  ;;  %p1967_p8 = scmp.lt.s32.totalorder %s1961_s24, %s1961_s24 }
 0x6fb   :  { %p1968_p9 = por %p1967_p8, %p1966_p7 }
 0x6fd   :  { %p1969_p10 = pnand %p1968_p9, %p1962_p6 }
 0x6ff   :  { %1972 = shalt.err (!%p1969_p10)
}
 0x700   :  { %s1973_s27 = scalar_lea.hbm %s2525_s12, 128 }
 0x701   :  { %p1974_p11 = scmp.ne.s32.totalorder %s2525_s12, %s1973_s27  ;;  %p1977_p12 = scmp.lt.u32.totalorder %s1973_s27, %s2525_s12 }
 0x703   :  { %p1979_p13 = pnand %p1977_p12, %p1974_p11 }
 0x705   :  { %1982 = shalt.err (!%p1979_p13)
}
 0x706   :  { %947 = dma.vmem_to_hbm [thread:$0]  %s945_s11, 128, %s2525_s12, [#allocation19]  }
 0x707   :  { %s1983_s13 = scalar_lea.vmem %s965_s1, 128  ;;  %p1988_p1 = scmp.lt.s32.totalorder %s965_s1, %s965_s1 }
 0x708   :  { %p1984_p0 = scmp.ne.s32.totalorder %s965_s1, %s1983_s13  ;;  %p1989_p2 = scmp.lt.s32.totalorder %s1983_s13, %s1983_s13 }
 0x70a   :  { %p1990_p3 = por %p1989_p2, %p1988_p1 }
 0x70c   :  { %p1991_p4 = pnand %p1990_p3, %p1984_p0 }
 0x70e   :  { %1994 = shalt.err (!%p1991_p4)
}
 0x70f   :  { %s1995_s20 = scalar_lea.hbm %s2527_s14, 128 }
 0x710   :  { %p1996_p5 = scmp.ne.s32.totalorder %s2527_s14, %s1995_s20  ;;  %p1999_p6 = scmp.lt.u32.totalorder %s1995_s20, %s2527_s14 }
 0x712   :  { %p2001_p7 = pnand %p1999_p6, %p1996_p5 }
 0x714   :  { %2004 = shalt.err (!%p2001_p7)
}
 0x715   :  { %967 = dma.vmem_to_hbm [thread:$0]  %s965_s1, 128, %s2527_s14, [#allocation22]  }
 0x716   :  { %s2089_s23 = smov [#allocation26]  }
 0x717   :  { %s984_s16 = sshll.u32 %s2089_s23, 4  ;;  %s985_s16 = int_to_ptr.vmem [resolvable:$true] %s984_s16 }
 0x718   :  { %s2005_s17 = scalar_lea.vmem %s985_s16, 128  ;;  %p2010_p9 = scmp.lt.s32.totalorder %s985_s16, %s985_s16 }
 0x719   :  { %p2006_p8 = scmp.ne.s32.totalorder %s985_s16, %s2005_s17  ;;  %p2011_p10 = scmp.lt.s32.totalorder %s2005_s17, %s2005_s17 }
 0x71b   :  { %p2012_p11 = por %p2011_p10, %p2010_p9 }
 0x71d   :  { %p2013_p12 = pnand %p2012_p11, %p2006_p8 }
 0x71f   :  { %2016 = shalt.err (!%p2013_p12)
}
 0x720   :  { %s2541_s4 = sld [smem:[#allocation41_spill]] }
 0x726   :  { %s2017_s11 = scalar_lea.hbm %s2541_s4, 128 }
 0x727   :  { %p2018_p13 = scmp.ne.s32.totalorder %s2541_s4, %s2017_s11  ;;  %p2021_p0 = scmp.lt.u32.totalorder %s2017_s11, %s2541_s4 }
 0x729   :  { %p2023_p1 = pnand %p2021_p0, %p2018_p13 }
 0x72b   :  { %2026 = shalt.err (!%p2023_p1)
}
 0x72c   :  { %987 = dma.vmem_to_hbm [thread:$0]  %s985_s16, 128, %s2541_s4, [#allocation25]   ;;  %v1039_v42 = vld [vmem:[%s2522_s9 + $0x7] ss:$0 sm:$0xff] }
 0x72d   :  { %s2090_s19 = smov [#allocation27]  }
 0x72e   :  { %s994_s10 = sshll.u32 %s2090_s19, 4  ;;  %s995_s10 = int_to_ptr.vmem [resolvable:$true] %s994_s10 }
 0x72f   :  { %s2027_s29 = scalar_lea.vmem %s995_s10, 128  ;;  %p2032_p3 = scmp.lt.s32.totalorder %s995_s10, %s995_s10 }
 0x730   :  { %p2028_p2 = scmp.ne.s32.totalorder %s995_s10, %s2027_s29  ;;  %p2033_p4 = scmp.lt.s32.totalorder %s2027_s29, %s2027_s29 }
 0x732   :  { %p2034_p5 = por %p2033_p4, %p2032_p3 }
 0x734   :  { %p2035_p6 = pnand %p2034_p5, %p2028_p2 }
 0x791   :  { %v907_v43 = vpop.f32.mrb[6].mxu1 }
 0x792   :  { %v908_v44 = vadd.f32 %v1039_v42, %v907_v43  ;;  %v1456_v45 = vpop.f32.mrb[7].mxu1 }
 0x794   :  { %v1040_v46 = vmul.f32 -1.442695, %v908_v44 }
 0x796   :  { %1671 = vpow2.f32 %v1040_v46 }
 0x7a0   :  { %v1672_v47 = vpop.eup %1671 }
 0x7a1   :  { %v914_v48 = vadd.f32 1.0, %v1672_v47 }
 0x7a3   :  { %1673 = vrcp.f32 %v914_v48 }
 0x7ad   :  { %v1674_v49 = vpop.eup %1673 }
 0x7ae   :  { %917 = vst [vmem:[#allocation27] sm:$0xff] %v1674_v49 }
 0x7af   :  { %2038 = shalt.err (!%p2035_p6)
}
 0x7b0   :  { %s2542_s3 = sld [smem:[#allocation42_spill]] }
 0x7b6   :  { %s2039_s13 = scalar_lea.hbm %s2542_s3, 128 }
 0x7b7   :  { %p2040_p7 = scmp.ne.s32.totalorder %s2542_s3, %s2039_s13  ;;  %p2043_p8 = scmp.lt.u32.totalorder %s2039_s13, %s2542_s3 }
 0x7b9   :  { %p2045_p9 = pnand %p2043_p8, %p2040_p7 }
 0x7bb   :  { %2048 = shalt.err (!%p2045_p9)
}
 0x7bc   :  { %997 = dma.vmem_to_hbm [thread:$0]  %s995_s10, 128, %s2542_s3, [#allocation28]  }
 0x7bd   :  { %2059 = dma.done.wait [#allocation4], 128  }
 0x7be   :  { %2060 = vsyncadd [#allocation4], 4294967168 }
 0x7bf   :  { %2061 = dma.done.wait [#allocation19], 256  }
 0x7c0   :  { %2062 = vsyncadd [#allocation19], 4294967040 }
 0x7c1   :  { %2063 = dma.done.wait [#allocation22], 256  }
 0x7c2   :  { %2064 = vsyncadd [#allocation22], 4294967040 }
 0x7c3   :  { %2065 = dma.done.wait [#allocation25], 256  }
 0x7c4   :  { %2066 = vsyncadd [#allocation25], 4294967040 }
 0x7c5   :  { %2067 = dma.done.wait [#allocation28], 128  }
 0x7c6   :  { %2068 = vsyncadd [#allocation28], 4294967168 }
 0x7c7   :  { %1022 = vsyncpa [#allocation3], 1 }
 0x7c8   :  { %1023 = vsyncpa [#allocation6], 1 }
 0x7c9   :  { %1024 = vsyncpa [#allocation9], 1 }
 0x7ca   :  { %1025 = vsyncpa [#allocation12], 1 }
 0x7cb   :  { %1026 = vsyncpa [#allocation15], 1 }
 0x7cc   :  { %1027 = vsyncpa [#allocation4], 1 }
 0x7cd   :  { %1028 = vsyncpa [#allocation19], 1 }
 0x7ce   :  { %1029 = vsyncpa [#allocation22], 1 }
 0x7cf   :  { %1030 = vsyncpa [#allocation25], 1 }
 0x7d0   :  { %1031 = vsyncpa [#allocation28], 1 }

// kernel: tpu_custom_call.1
= control target key start
LH: loop header
LB: loop body
LE: loop exit
PB: predicated region body
PF: predicated region fallthrough
CT: control target
= control target key end

     0   :  { %s2513_s0 = inlined_call_operand.hbm [shape: f32[8,128], index: 0, kind: input, shape index: {}]   ;;  %s2514_s1 = inlined_call_operand.hbm [shape: f32[128,128], index: 1, kind: input, shape index: {}]   ;;  %s2515_s2 = inlined_call_operand.hbm [shape: f32[128,128], index: 2, kind: input, shape index: {}]   ;;  %s2516_s3 = inlined_call_operand.hbm [shape: f32[128,128], index: 3, kind: input, shape index: {}]   ;;  %s2517_s4 = inlined_call_operand.hbm [shape: f32[128,128], index: 4, kind: input, shape index: {}]   ;;  %s2518_s5 = inlined_call_operand.hbm [shape: f32[128,128], index: 5, kind: input, shape index: {}]   ;;  %s2519_s6 = inlined_call_operand.hbm [shape: f32[128,128], index: 6, kind: input, shape index: {}]   ;;  %s2520_s7 = inlined_call_operand.hbm [shape: f32[128,128], index: 7, kind: input, shape index: {}]   ;;  %s2521_s8 = inlined_call_operand.hbm [shape: f32[128,128], index: 8, kind: input, shape index: {}]   ;;  %s2522_s9 = inlined_call_operand.vmem [shape: f32[8,128], index: 9, kind: input, shape index: {}]   ;;  %s2523_s10 = inlined_call_operand.hbm [shape: f32[8,128], index: 10, kind: output, shape index: {0}]   ;;  %s2524_s11 = inlined_call_operand.hbm [shape: f32[8,128], index: 11, kind: output, shape index: {1}]   ;;  %s2525_s12 = inlined_call_operand.hbm [shape: f32[8,128], index: 12, kind: output, shape index: {2}]   ;;  %s2526_s13 = inlined_call_operand.hbm [shape: f32[8,128], index: 13, kind: output, shape index: {3}]   ;;  %s2527_s14 = inlined_call_operand.hbm [shape: f32[8,128], index: 14, kind: output, shape index: {4}]   ;;  %s2528_s15 = inlined_call_operand.hbm [shape: f32[8,128], index: 15, kind: output, shape index: {5}]   ;;  %s2529_s16 = inlined_call_operand.hbm [shape: f32[8,128], index: 16, kind: output, shape index: {6}]   ;;  %s2530_s17 = inlined_call_operand.hbm [shape: f32[8,128], index: 17, kind: output, shape index: {7}]  }
   0x1   :  { %2535 = sst [smem:[#allocation39_spill]] %s2513_s0 }
   0x2   :  { %2536 = sst [smem:[#allocation40_spill]] %s2514_s1 }
   0x3   :  { %2537 = sst [smem:[#allocation41_spill]] %s2529_s16 }
   0x4   :  { %2538 = sst [smem:[#allocation42_spill]] %s2530_s17 }
   0x5   :  { %23 = vsyncpa [#allocation3], 0 }
   0x6   :  { %24 = vsyncpa [#allocation6], 0 }
   0x7   :  { %25 = vsyncpa [#allocation9], 0 }
   0x8   :  { %26 = vsyncpa [#allocation12], 0 }
   0x9   :  { %27 = vsyncpa [#allocation15], 0 }
   0xa   :  { %28 = vsyncpa [#allocation4], 0 }
   0xb   :  { %29 = vsyncpa [#allocation19], 0 }
   0xc   :  { %30 = vsyncpa [#allocation22], 0 }
   0xd   :  { %31 = vsyncpa [#allocation25], 0 }
   0xe   :  { %32 = vsyncpa [#allocation28], 0  ;;  %s2069_s24 = smov [#allocation5]   ;;  %s2539_s28 = sld [smem:[#allocation40_spill]] }
   0xf   :  { %s48_s25 = sshll.u32 %s2069_s24, 4  ;;  %s49_s25 = int_to_ptr.vmem [resolvable:$true] %s48_s25 }
  0x14   :  { %s1675_s29 = scalar_lea.hbm %s2539_s28, 2048 }
  0x15   :  { %p1676_p0 = scmp.ne.s32.totalorder %s2539_s28, %s1675_s29  ;;  %p1679_p1 = scmp.lt.u32.totalorder %s1675_s29, %s2539_s28 }
  0x17   :  { %p1681_p2 = pnand %p1679_p1, %p1676_p0 }
  0x19   :  { %1684 = shalt.err (!%p1681_p2)
}
  0x1a   :  { %s1685_s1 = scalar_lea.vmem %s49_s25, 2048  ;;  %p1690_p4 = scmp.lt.s32.totalorder %s49_s25, %s49_s25 }
  0x1b   :  { %p1686_p3 = scmp.ne.s32.totalorder %s49_s25, %s1685_s1  ;;  %p1691_p5 = scmp.lt.s32.totalorder %s1685_s1, %s1685_s1 }
  0x1d   :  { %p1692_p6 = por %p1691_p5, %p1690_p4 }
  0x1f   :  { %p1693_p7 = pnand %p1692_p6, %p1686_p3 }
  0x21   :  { %1696 = shalt.err (!%p1693_p7)
}
  0x22   :  { %s2070_s20 = smov 128   ;;  %s2071_s21 = smov 8  }
  0x23   :  { %54 = dma.hbm_to_vmem [thread:$0]  %s2539_s28, 2048, %s49_s25, [#allocation6], %s2070_s20, %s2070_s20, %s2071_s21  }
  0x24   :  { %s2072_s24 = smov [#allocation8]   ;;  %s2073_s27 = smov [#allocation11]  }
  0x25   :  { %s72_s26 = sshll.u32 %s2072_s24, 4  ;;  %s96_s29 = sshll.u32 %s2073_s27, 4  ;;  %s73_s26 = int_to_ptr.vmem [resolvable:$true] %s72_s26  ;;  %s97_s29 = int_to_ptr.vmem [resolvable:$true] %s96_s29 }
  0x26   :  { %s1697_s18 = scalar_lea.hbm %s2516_s3, 2048 }
  0x27   :  { %p1698_p8 = scmp.ne.s32.totalorder %s2516_s3, %s1697_s18  ;;  %p1701_p9 = scmp.lt.u32.totalorder %s1697_s18, %s2516_s3 }
  0x29   :  { %p1703_p10 = pnand %p1701_p9, %p1698_p8 }
  0x2b   :  { %1706 = shalt.err (!%p1703_p10)
}
  0x2c   :  { %s1707_s25 = scalar_lea.vmem %s73_s26, 2048  ;;  %p1712_p12 = scmp.lt.s32.totalorder %s73_s26, %s73_s26 }
  0x2d   :  { %p1708_p11 = scmp.ne.s32.totalorder %s73_s26, %s1707_s25  ;;  %p1713_p13 = scmp.lt.s32.totalorder %s1707_s25, %s1707_s25 }
  0x2f   :  { %p1714_p0 = por %p1713_p13, %p1712_p12 }
  0x31   :  { %p1715_p1 = pnand %p1714_p0, %p1708_p11 }
  0x33   :  { %1718 = shalt.err (!%p1715_p1)
}
  0x34   :  { %78 = dma.hbm_to_vmem [thread:$0]  %s2516_s3, 2048, %s73_s26, [#allocation9], %s2070_s20, %s2070_s20, %s2071_s21  }
  0x35   :  { %s1719_s17 = scalar_lea.hbm %s2518_s5, 2048 }
  0x36   :  { %p1720_p2 = scmp.ne.s32.totalorder %s2518_s5, %s1719_s17  ;;  %p1723_p3 = scmp.lt.u32.totalorder %s1719_s17, %s2518_s5 }
  0x38   :  { %p1725_p4 = pnand %p1723_p3, %p1720_p2 }
  0x3a   :  { %1728 = shalt.err (!%p1725_p4)
}
  0x3b   :  { %s1729_s18 = scalar_lea.vmem %s97_s29, 2048  ;;  %p1734_p6 = scmp.lt.s32.totalorder %s97_s29, %s97_s29 }
  0x3c   :  { %p1730_p5 = scmp.ne.s32.totalorder %s97_s29, %s1729_s18  ;;  %p1735_p7 = scmp.lt.s32.totalorder %s1729_s18, %s1729_s18 }
  0x3e   :  { %p1736_p8 = por %p1735_p7, %p1734_p6 }
  0x40   :  { %p1737_p9 = pnand %p1736_p8, %p1730_p5 }
  0x42   :  { %1740 = shalt.err (!%p1737_p9)
}
  0x43   :  { %102 = dma.hbm_to_vmem [thread:$0]  %s2518_s5, 2048, %s97_s29, [#allocation12], %s2070_s20, %s2070_s20, %s2071_s21  }
  0x44   :  { %s2074_s19 = smov [#allocation14]   ;;  %s2075_s25 = smov [#allocation2]  }
  0x45   :  { %s120_s1 = sshll.u32 %s2074_s19, 4  ;;  %s39_s28 = sshll.u32 %s2075_s25, 4  ;;  %s121_s1 = int_to_ptr.vmem [resolvable:$true] %s120_s1  ;;  %s40_s28 = int_to_ptr.vmem [resolvable:$true] %s39_s28 }
  0x46   :  { %s1741_s16 = scalar_lea.hbm %s2520_s7, 2048 }
  0x47   :  { %p1742_p10 = scmp.ne.s32.totalorder %s2520_s7, %s1741_s16  ;;  %p1745_p11 = scmp.lt.u32.totalorder %s1741_s16, %s2520_s7 }
  0x49   :  { %p1747_p12 = pnand %p1745_p11, %p1742_p10 }
  0x4b   :  { %1750 = shalt.err (!%p1747_p12)
}
  0x4c   :  { %s1751_s5 = scalar_lea.vmem %s121_s1, 2048  ;;  %p1756_p0 = scmp.lt.s32.totalorder %s121_s1, %s121_s1 }
  0x4d   :  { %p1752_p13 = scmp.ne.s32.totalorder %s121_s1, %s1751_s5  ;;  %p1757_p1 = scmp.lt.s32.totalorder %s1751_s5, %s1751_s5 }
  0x4f   :  { %p1758_p2 = por %p1757_p1, %p1756_p0 }
  0x51   :  { %p1759_p3 = pnand %p1758_p2, %p1752_p13 }
  0x53   :  { %1762 = shalt.err (!%p1759_p3)
}
  0x54   :  { %126 = dma.hbm_to_vmem [thread:$0]  %s2520_s7, 2048, %s121_s1, [#allocation15], %s2070_s20, %s2070_s20, %s2071_s21  }
  0x55   :  { %s2540_s26 = sld [smem:[#allocation39_spill]] }
  0x5b   :  { %s1763_s19 = scalar_lea.hbm %s2540_s26, 128 }
  0x5c   :  { %p1764_p4 = scmp.ne.s32.totalorder %s2540_s26, %s1763_s19  ;;  %p1767_p5 = scmp.lt.u32.totalorder %s1763_s19, %s2540_s26 }
  0x5e   :  { %p1769_p6 = pnand %p1767_p5, %p1764_p4 }
  0x60   :  { %1772 = shalt.err (!%p1769_p6)
}
  0x61   :  { %s1773_s17 = scalar_lea.vmem %s40_s28, 128  ;;  %p1778_p8 = scmp.lt.s32.totalorder %s40_s28, %s40_s28 }
  0x62   :  { %p1774_p7 = scmp.ne.s32.totalorder %s40_s28, %s1773_s17  ;;  %p1779_p9 = scmp.lt.s32.totalorder %s1773_s17, %s1773_s17 }
  0x64   :  { %p1780_p10 = por %p1779_p9, %p1778_p8 }
  0x66   :  { %p1781_p11 = pnand %p1780_p10, %p1774_p7 }
  0x68   :  { %1784 = shalt.err (!%p1781_p11)
}
  0x69   :  { %42 = dma.hbm_to_vmem [thread:$0]  %s2540_s26, 128, %s40_s28, [#allocation3]  }
  0x6a   :  { %s2076_s24 = smov [#allocation7]   ;;  %s2077_s0 = smov [#allocation10]  }
  0x6b   :  { %s60_s27 = sshll.u32 %s2076_s24, 4  ;;  %s84_s5 = sshll.u32 %s2077_s0, 4  ;;  %s61_s27 = int_to_ptr.vmem [resolvable:$true] %s60_s27  ;;  %s85_s5 = int_to_ptr.vmem [resolvable:$true] %s84_s5 }
  0x6c   :  { %s1785_s18 = scalar_lea.hbm %s2515_s2, 2048 }
  0x6d   :  { %p1786_p12 = scmp.ne.s32.totalorder %s2515_s2, %s1785_s18  ;;  %p1789_p13 = scmp.lt.u32.totalorder %s1785_s18, %s2515_s2 }
  0x6f   :  { %p1791_p0 = pnand %p1789_p13, %p1786_p12 }
  0x71   :  { %1794 = shalt.err (!%p1791_p0)
}
  0x72   :  { %s1795_s28 = scalar_lea.vmem %s61_s27, 2048  ;;  %p1800_p2 = scmp.lt.s32.totalorder %s61_s27, %s61_s27 }
  0x73   :  { %p1796_p1 = scmp.ne.s32.totalorder %s61_s27, %s1795_s28  ;;  %p1801_p3 = scmp.lt.s32.totalorder %s1795_s28, %s1795_s28 }
  0x75   :  { %p1802_p4 = por %p1801_p3, %p1800_p2 }
  0x77   :  { %p1803_p5 = pnand %p1802_p4, %p1796_p1 }
  0x79   :  { %1806 = shalt.err (!%p1803_p5)
}
  0x7a   :  { %66 = dma.hbm_to_vmem [thread:$0]  %s2515_s2, 2048, %s61_s27, [#allocation6], %s2070_s20, %s2070_s20, %s2071_s21  }
  0x7b   :  { %s1807_s7 = scalar_lea.hbm %s2517_s4, 2048 }
  0x7c   :  { %p1808_p6 = scmp.ne.s32.totalorder %s2517_s4, %s1807_s7  ;;  %p1811_p7 = scmp.lt.u32.totalorder %s1807_s7, %s2517_s4 }
  0x7e   :  { %p1813_p8 = pnand %p1811_p7, %p1808_p6 }
  0x80   :  { %1816 = shalt.err (!%p1813_p8)
}
  0x81   :  { %s1817_s30 = scalar_lea.vmem %s85_s5, 2048  ;;  %p1822_p10 = scmp.lt.s32.totalorder %s85_s5, %s85_s5 }
  0x82   :  { %p1818_p9 = scmp.ne.s32.totalorder %s85_s5, %s1817_s30  ;;  %p1823_p11 = scmp.lt.s32.totalorder %s1817_s30, %s1817_s30 }
  0x84   :  { %p1824_p12 = por %p1823_p11, %p1822_p10 }
  0x86   :  { %p1825_p13 = pnand %p1824_p12, %p1818_p9 }
  0x88   :  { %1828 = shalt.err (!%p1825_p13)
}
  0x89   :  { %90 = dma.hbm_to_vmem [thread:$0]  %s2517_s4, 2048, %s85_s5, [#allocation9], %s2070_s20, %s2070_s20, %s2071_s21  }
  0x8a   :  { %s2078_s18 = smov [#allocation13]   ;;  %s2079_s19 = smov [#allocation16]  }
  0x8b   :  { %s108_s3 = sshll.u32 %s2078_s18, 4  ;;  %s132_s25 = sshll.u32 %s2079_s19, 4  ;;  %s109_s3 = int_to_ptr.vmem [resolvable:$true] %s108_s3  ;;  %s133_s25 = int_to_ptr.vmem [resolvable:$true] %s132_s25 }
  0x8c   :  { %s1829_s26 = scalar_lea.hbm %s2519_s6, 2048 }
  0x8d   :  { %p1830_p0 = scmp.ne.s32.totalorder %s2519_s6, %s1829_s26  ;;  %p1833_p1 = scmp.lt.u32.totalorder %s1829_s26, %s2519_s6 }
  0x8f   :  { %p1835_p2 = pnand %p1833_p1, %p1830_p0 }
  0x91   :  { %1838 = shalt.err (!%p1835_p2)
}
  0x92   :  { %s1839_s4 = scalar_lea.vmem %s109_s3, 2048  ;;  %p1844_p4 = scmp.lt.s32.totalorder %s109_s3, %s109_s3 }
  0x93   :  { %p1840_p3 = scmp.ne.s32.totalorder %s109_s3, %s1839_s4  ;;  %p1845_p5 = scmp.lt.s32.totalorder %s1839_s4, %s1839_s4 }
  0x95   :  { %p1846_p6 = por %p1845_p5, %p1844_p4 }
  0x97   :  { %p1847_p7 = pnand %p1846_p6, %p1840_p3 }
  0x99   :  { %1850 = shalt.err (!%p1847_p7)
}
  0x9a   :  { %114 = dma.hbm_to_vmem [thread:$0]  %s2519_s6, 2048, %s109_s3, [#allocation12], %s2070_s20, %s2070_s20, %s2071_s21  }
  0x9b   :  { %s1851_s29 = scalar_lea.hbm %s2521_s8, 2048 }
  0x9c   :  { %p1852_p8 = scmp.ne.s32.totalorder %s2521_s8, %s1851_s29  ;;  %p1855_p9 = scmp.lt.u32.totalorder %s1851_s29, %s2521_s8 }
  0x9e   :  { %p1857_p10 = pnand %p1855_p9, %p1852_p8 }
  0xa0   :  { %1860 = shalt.err (!%p1857_p10)
}
  0xa1   :  { %s1861_s19 = scalar_lea.vmem %s133_s25, 2048  ;;  %p1866_p12 = scmp.lt.s32.totalorder %s133_s25, %s133_s25 }
  0xa2   :  { %p1862_p11 = scmp.ne.s32.totalorder %s133_s25, %s1861_s19  ;;  %p1867_p13 = scmp.lt.s32.totalorder %s1861_s19, %s1861_s19 }
  0xa4   :  { %p1868_p0 = por %p1867_p13, %p1866_p12 }
  0xa6   :  { %p1869_p1 = pnand %p1868_p0, %p1862_p11 }
  0xa8   :  { %1872 = shalt.err (!%p1869_p1)
}
  0xa9   :  { %138 = dma.hbm_to_vmem [thread:$0]  %s2521_s8, 2048, %s133_s25, [#allocation15], %s2070_s20, %s2070_s20, %s2071_s21  }
  0xaa   :  { %2049 = dma.done.wait [#allocation3], 128  }
  0xab   :  { %2050 = vsyncadd [#allocation3], 4294967168 }
  0xac   :  { %2051 = dma.done.wait [#allocation6], 4096  }
  0xad   :  { %2052 = vsyncadd [#allocation6], 4294963200 }
  0xae   :  { %2053 = dma.done.wait [#allocation9], 4096  }
  0xaf   :  { %2054 = vsyncadd [#allocation9], 4294963200 }
  0xb0   :  { %2055 = dma.done.wait [#allocation12], 4096  }
  0xb1   :  { %2056 = vsyncadd [#allocation12], 4294963200 }
  0xb2   :  { %2057 = dma.done.wait [#allocation15], 4096  }
  0xb3   :  { %2058 = vsyncadd [#allocation15], 4294963200  ;;  %v2080_v0 = vmov 0.0|0.0   ;;  %vm2081_vm0 = vmmov 0   ;;  %v2082_v1 = vmov 0.0   ;;  %v169_v2 = vld [vmem:[#allocation5] sm:$0xff] }
  0xb4   :  { %1457 = vmatprep.subr.bf16.mxu0 %v2080_v0  ;;  %1209 = vmatprep.mubr.msk.f32.mxu0 %vm2081_vm0, %v2082_v1  ;;  %v170_v3 = vld [vmem:[#allocation5 + $0x8] sm:$0xff]  ;;  %v171_v4 = vld [vmem:[#allocation5 + $0x10] sm:$0xff]  ;;  %v172_v6 = vld [vmem:[#allocation5 + $0x18] sm:$0xff]  ;;  %s2083_s24 = smov [#allocation18]   ;;  %s2084_s29 = smov [#allocation21]  }
  0xb5   :  { %1481 = vmatprep.subr.bf16.mxu1 %v2080_v0  ;;  %1244 = vmatprep.mubr.msk.f32.mxu1 %vm2081_vm0, %v2082_v1  ;;  %v1458_v5 = vpack.c.bf16 %v170_v3, %v169_v2  ;;  %v1461_v7 = vpack.c.bf16 %v172_v6, %v171_v4  ;;  %v173_v8 = vld [vmem:[#allocation5 + $0x20] sm:$0xff]  ;;  %v174_v9 = vld [vmem:[#allocation5 + $0x28] sm:$0xff]  ;;  %v264_v12 = vld [vmem:[#allocation7 + $0x10] sm:$0xff]  ;;  %s934_s0 = sshll.u32 %s2083_s24, 4  ;;  %s954_s30 = sshll.u32 %s2084_s29, 4  ;;  %s935_s0 = int_to_ptr.vmem [resolvable:$true] %s934_s0  ;;  %s955_s30 = int_to_ptr.vmem [resolvable:$true] %s954_s30 }
  0xb6   :  { %v262_v10 = vld [vmem:[#allocation7] sm:$0xff]  ;;  %v263_v11 = vld [vmem:[#allocation7 + $0x8] sm:$0xff]  ;;  %v265_v13 = vld [vmem:[#allocation7 + $0x18] sm:$0xff]  ;;  %v1464_v14 = vpack.c.bf16 %v174_v9, %v173_v8  ;;  %s1873_s2 = scalar_lea.vmem %s935_s0, 128  ;;  %p1878_p3 = scmp.lt.s32.totalorder %s935_s0, %s935_s0 }
  0xb7   :  { %1459 = vmatpush3.bf16.msra.mxu0 %v1458_v5  ;;  %v1482_v15 = vpack.c.bf16 %v263_v11, %v262_v10  ;;  %v175_v16 = vld [vmem:[#allocation5 + $0x30] sm:$0xff]  ;;  %v176_v17 = vld [vmem:[#allocation5 + $0x38] sm:$0xff]  ;;  %v1485_v18 = vpack.c.bf16 %v265_v13, %v264_v12  ;;  %v266_v19 = vld [vmem:[#allocation7 + $0x20] sm:$0xff]  ;;  %p1874_p2 = scmp.ne.s32.totalorder %s935_s0, %s1873_s2  ;;  %p1879_p4 = scmp.lt.s32.totalorder %s1873_s2, %s1873_s2 }
  0xb8   :  { %1460 = vmatprep.subr.bf16.mxu0 %v2080_v0  ;;  %v267_v20 = vld [vmem:[#allocation7 + $0x28] sm:$0xff]  ;;  %v1467_v21 = vpack.c.bf16 %v176_v17, %v175_v16  ;;  %v177_v22 = vld [vmem:[#allocation5 + $0x40] sm:$0xff]  ;;  %v268_v25 = vld [vmem:[#allocation7 + $0x30] sm:$0xff] }
  0xb9   :  { %1483 = vmatpush3.bf16.msra.mxu1 %v1482_v15  ;;  %v178_v23 = vld [vmem:[#allocation5 + $0x48] sm:$0xff]  ;;  %v1488_v24 = vpack.c.bf16 %v267_v20, %v266_v19  ;;  %v269_v26 = vld [vmem:[#allocation7 + $0x38] sm:$0xff]  ;;  %v179_v28 = vld [vmem:[#allocation5 + $0x50] sm:$0xff]  ;;  %p1880_p5 = por %p1879_p4, %p1878_p3 }
  0xba   :  { %1484 = vmatprep.subr.bf16.mxu1 %v2080_v0  ;;  %v1470_v27 = vpack.c.bf16 %v178_v23, %v177_v22  ;;  %v180_v29 = vld [vmem:[#allocation5 + $0x58] sm:$0xff]  ;;  %v1491_v30 = vpack.c.bf16 %v269_v26, %v268_v25  ;;  %v270_v31 = vld [vmem:[#allocation7 + $0x40] sm:$0xff]  ;;  %v271_v32 = vld [vmem:[#allocation7 + $0x48] sm:$0xff] }
  0xbb   :  { %1462 = vmatpush3.bf16.msra.mxu0 %v1461_v7  ;;  %v1473_v33 = vpack.c.bf16 %v180_v29, %v179_v28  ;;  %v181_v34 = vld [vmem:[#allocation5 + $0x60] sm:$0xff]  ;;  %v182_v35 = vld [vmem:[#allocation5 + $0x68] sm:$0xff]  ;;  %v1494_v36 = vpack.c.bf16 %v271_v32, %v270_v31  ;;  %v272_v37 = vld [vmem:[#allocation7 + $0x50] sm:$0xff]  ;;  %p1881_p6 = pnand %p1880_p5, %p1874_p2 }
  0xbc   :  { %1463 = vmatprep.subr.bf16.mxu0 %v2080_v0  ;;  %v273_v38 = vld [vmem:[#allocation7 + $0x58] sm:$0xff]  ;;  %v1476_v39 = vpack.c.bf16 %v182_v35, %v181_v34  ;;  %v183_v40 = vld [vmem:[#allocation5 + $0x70] sm:$0xff]  ;;  %v274_v43 = vld [vmem:[#allocation7 + $0x60] sm:$0xff] }
  0xbd   :  { %1486 = vmatpush3.bf16.msra.mxu1 %v1485_v18  ;;  %v184_v41 = vld [vmem:[#allocation5 + $0x78] sm:$0xff]  ;;  %v1497_v42 = vpack.c.bf16 %v273_v38, %v272_v37  ;;  %v275_v44 = vld [vmem:[#allocation7 + $0x68] sm:$0xff]  ;;  %v276_v48 = vld [vmem:[#allocation7 + $0x70] sm:$0xff] }
  0xbe   :  { %1487 = vmatprep.subr.bf16.mxu1 %v2080_v0  ;;  %v1479_v45 = vpack.c.bf16 %v184_v41, %v183_v40  ;;  %v1500_v46 = vpack.c.bf16 %v275_v44, %v274_v43  ;;  %v168_v47 = vld [vmem:[#allocation2] sm:$0xff]  ;;  %v355_v51 = vld [vmem:[#allocation8] sm:$0xff]  ;;  %v356_v52 = vld [vmem:[#allocation8 + $0x8] sm:$0xff] }
  0xbf   :  { %1465 = vmatpush3.bf16.msra.mxu0 %v1464_v14  ;;  %v277_v49 = vld [vmem:[#allocation7 + $0x78] sm:$0xff]  ;;  %v357_v53 = vld [vmem:[#allocation8 + $0x10] sm:$0xff]  ;;  %v1506_v54 = vpack.c.bf16 %v356_v52, %v355_v51  ;;  %v359_v57 = vld [vmem:[#allocation8 + $0x20] sm:$0xff] }
  0xc0   :  { %1466 = vmatprep.subr.bf16.mxu0 %v2080_v0  ;;  %v1503_v50 = vpack.c.bf16 %v277_v49, %v276_v48  ;;  %v358_v55 = vld [vmem:[#allocation8 + $0x18] sm:$0xff]  ;;  %v360_v58 = vld [vmem:[#allocation8 + $0x28] sm:$0xff]  ;;  %v361_v60 = vld [vmem:[#allocation8 + $0x30] sm:$0xff] }
  0xc1   :  { %1489 = vmatpush3.bf16.msra.mxu1 %v1488_v24  ;;  %v1509_v56 = vpack.c.bf16 %v358_v55, %v357_v53  ;;  %v1512_v59 = vpack.c.bf16 %v360_v58, %v359_v57  ;;  %v362_v61 = vld [vmem:[#allocation8 + $0x38] sm:$0xff]  ;;  %v363_v63 = vld [vmem:[#allocation8 + $0x40] sm:$0xff]  ;;  %v364_v2 = vld [vmem:[#allocation8 + $0x48] sm:$0xff] }
  0xc2   :  { %1490 = vmatprep.subr.bf16.mxu1 %v2080_v0  ;;  %v1515_v62 = vpack.c.bf16 %v362_v61, %v361_v60  ;;  %v1518_v3 = vpack.c.bf16 %v364_v2, %v363_v63  ;;  %v365_v4 = vld [vmem:[#allocation8 + $0x50] sm:$0xff]  ;;  %v366_v5 = vld [vmem:[#allocation8 + $0x58] sm:$0xff]  ;;  %v367_v7 = vld [vmem:[#allocation8 + $0x60] sm:$0xff] }
  0xc3   :  { %1468 = vmatpush3.bf16.msra.mxu0 %v1467_v21  ;;  %v1521_v6 = vpack.c.bf16 %v366_v5, %v365_v4  ;;  %v368_v8 = vld [vmem:[#allocation8 + $0x68] sm:$0xff]  ;;  %v1032_v10 = vld [vmem:[%s2522_s9] ss:$0 sm:$0xff]  ;;  %v369_v15 = vld [vmem:[#allocation8 + $0x70] sm:$0xff] }
  0xc4   :  { %1469 = vmatprep.subr.bf16.mxu0 %v2080_v0  ;;  %v1524_v9 = vpack.c.bf16 %v368_v8, %v367_v7  ;;  %v370_v16 = vld [vmem:[#allocation8 + $0x78] sm:$0xff]  ;;  %v448_v18 = vld [vmem:[#allocation10] sm:$0xff]  ;;  %v449_v19 = vld [vmem:[#allocation10 + $0x8] sm:$0xff] }
  0xc5   :  { %1492 = vmatpush3.bf16.msra.mxu1 %v1491_v30  ;;  %v1527_v17 = vpack.c.bf16 %v370_v16, %v369_v15  ;;  %v450_v20 = vld [vmem:[#allocation10 + $0x10] sm:$0xff]  ;;  %v1530_v21 = vpack.c.bf16 %v449_v19, %v448_v18  ;;  %v451_v22 = vld [vmem:[#allocation10 + $0x18] sm:$0xff]  ;;  %v452_v24 = vld [vmem:[#allocation10 + $0x20] sm:$0xff] }
  0xc6   :  { %1493 = vmatprep.subr.bf16.mxu1 %v2080_v0  ;;  %v1533_v23 = vpack.c.bf16 %v451_v22, %v450_v20  ;;  %v453_v25 = vld [vmem:[#allocation10 + $0x28] sm:$0xff]  ;;  %v455_v28 = vld [vmem:[#allocation10 + $0x38] sm:$0xff]  ;;  %v456_v30 = vld [vmem:[#allocation10 + $0x40] sm:$0xff] }
  0xc7   :  { %1471 = vmatpush3.bf16.msra.mxu0 %v1470_v27  ;;  %v1536_v26 = vpack.c.bf16 %v453_v25, %v452_v24  ;;  %v454_v27 = vld [vmem:[#allocation10 + $0x30] sm:$0xff]  ;;  %v457_v31 = vld [vmem:[#allocation10 + $0x48] sm:$0xff]  ;;  %v459_v34 = vld [vmem:[#allocation10 + $0x58] sm:$0xff] }
  0xc8   :  { %1472 = vmatprep.subr.bf16.mxu0 %v2080_v0  ;;  %v1539_v29 = vpack.c.bf16 %v455_v28, %v454_v27  ;;  %v1542_v32 = vpack.c.bf16 %v457_v31, %v456_v30  ;;  %v461_v37 = vld [vmem:[#allocation10 + $0x68] sm:$0xff]  ;;  %v462_v44 = vld [vmem:[#allocation10 + $0x70] sm:$0xff]  ;;  %v544_v51 = vld [vmem:[#allocation11 + $0x18] sm:$0xff] }
  0xc9   :  { %1495 = vmatpush3.bf16.msra.mxu1 %v1494_v36  ;;  %v460_v36 = vld [vmem:[#allocation10 + $0x60] sm:$0xff]  ;;  %v542_v48 = vld [vmem:[#allocation11 + $0x8] sm:$0xff]  ;;  %v543_v49 = vld [vmem:[#allocation11 + $0x10] sm:$0xff] }
  0xca   :  { %1496 = vmatprep.subr.bf16.mxu1 %v2080_v0  ;;  %v1548_v38 = vpack.c.bf16 %v461_v37, %v460_v36  ;;  %v1557_v52 = vpack.c.bf16 %v544_v51, %v543_v49  ;;  %v545_v53 = vld [vmem:[#allocation11 + $0x20] sm:$0xff]  ;;  %v548_v57 = vld [vmem:[#allocation11 + $0x38] sm:$0xff]  ;;  %v550_v60 = vld [vmem:[#allocation11 + $0x48] sm:$0xff] }
  0xcb   :  { %1474 = vmatpush3.bf16.msra.mxu0 %v1473_v33  ;;  %v458_v33 = vld [vmem:[#allocation10 + $0x50] sm:$0xff]  ;;  %v552_v63 = vld [vmem:[#allocation11 + $0x58] sm:$0xff]  ;;  %v554_v4 = vld [vmem:[#allocation11 + $0x68] sm:$0xff] }
  0xcc   :  { %1475 = vmatprep.subr.bf16.mxu0 %v2080_v0  ;;  %v1545_v35 = vpack.c.bf16 %v459_v34, %v458_v33  ;;  %v635_v15 = vld [vmem:[#allocation13 + $0x8] sm:$0xff]  ;;  %v636_v16 = vld [vmem:[#allocation13 + $0x10] sm:$0xff]  ;;  %v637_v18 = vld [vmem:[#allocation13 + $0x18] sm:$0xff] }
  0xcd   :  { %1498 = vmatpush3.bf16.msra.mxu1 %v1497_v42  ;;  %v1581_v19 = vpack.c.bf16 %v637_v18, %v636_v16  ;;  %v638_v20 = vld [vmem:[#allocation13 + $0x20] sm:$0xff]  ;;  %v641_v24 = vld [vmem:[#allocation13 + $0x38] sm:$0xff]  ;;  %v643_v27 = vld [vmem:[#allocation13 + $0x48] sm:$0xff] }
  0xce   :  { %1499 = vmatprep.subr.bf16.mxu1 %v2080_v0  ;;  %v645_v30 = vld [vmem:[#allocation13 + $0x58] sm:$0xff]  ;;  %v647_v33 = vld [vmem:[#allocation13 + $0x68] sm:$0xff]  ;;  %v731_v49 = vld [vmem:[#allocation14 + $0x20] sm:$0xff] }
  0xcf   :  { %1477 = vmatpush3.bf16.msra.mxu0 %v1476_v39  ;;  %v1033_v39 = vld [vmem:[%s2522_s9 + $0x1] ss:$0 sm:$0xff]  ;;  %v824_v16 = vld [vmem:[#allocation16 + $0x20] sm:$0xff] }
  0xd0   :  { %1478 = vmatprep.subr.bf16.mxu0 %v2080_v0 }
  0xd1   :  { %1501 = vmatpush3.bf16.msra.mxu1 %v1500_v46 }
  0xd2   :  { %1502 = vmatprep.subr.bf16.mxu1 %v2080_v0 }
  0xd3   :  { %1480 = vmatpush3.bf16.msra.mxu0 %v1479_v45  ;;  %v463_v45 = vld [vmem:[#allocation10 + $0x78] sm:$0xff] }
  0xd4   :  { %1505 = vmatprep.subr.bf16.mxu0 %v2080_v0  ;;  %v1551_v46 = vpack.c.bf16 %v463_v45, %v462_v44  ;;  %v728_v44 = vld [vmem:[#allocation14 + $0x8] sm:$0xff]  ;;  %v729_v45 = vld [vmem:[#allocation14 + $0x10] sm:$0xff] }
  0xd5   :  { %1504 = vmatpush3.bf16.msra.mxu1 %v1503_v50 }
  0xd6   :  { %1210 = vmatmul.mubr.f32.vlgmr.msra.gmra.mrb[0].mxu0 %v168_v47  ;;  %1529 = vmatprep.subr.bf16.mxu1 %v2080_v0  ;;  %v541_v47 = vld [vmem:[#allocation11] sm:$0xff] }
  0xd7   :  { %1279 = vmatprep.mubr.msk.f32.mxu0 %vm2081_vm0, %v2082_v1  ;;  %1507 = vmatpush3.bf16.msra.mxu0 %v1506_v54  ;;  %v1554_v50 = vpack.c.bf16 %v542_v48, %v541_v47  ;;  %v546_v54 = vld [vmem:[#allocation11 + $0x28] sm:$0xff]  ;;  %v730_v47 = vld [vmem:[#allocation14 + $0x18] sm:$0xff] }
  0xd8   :  { %1508 = vmatprep.subr.bf16.mxu0 %v2080_v0  ;;  %v1560_v55 = vpack.c.bf16 %v546_v54, %v545_v53  ;;  %v1605_v48 = vpack.c.bf16 %v730_v47, %v729_v45  ;;  %v734_v53 = vld [vmem:[#allocation14 + $0x38] sm:$0xff] }
  0xdb   :  { %1510 = vmatpush3.bf16.msra.mxu0 %v1509_v56  ;;  %v547_v56 = vld [vmem:[#allocation11 + $0x30] sm:$0xff] }
  0xdc   :  { %1511 = vmatprep.subr.bf16.mxu0 %v2080_v0  ;;  %v1563_v58 = vpack.c.bf16 %v548_v57, %v547_v56  ;;  %v736_v56 = vld [vmem:[#allocation14 + $0x48] sm:$0xff] }
  0xdf   :  { %1513 = vmatpush3.bf16.msra.mxu0 %v1512_v59  ;;  %v549_v59 = vld [vmem:[#allocation11 + $0x40] sm:$0xff] }
  0xe0   :  { %1514 = vmatprep.subr.bf16.mxu0 %v2080_v0  ;;  %v1566_v61 = vpack.c.bf16 %v550_v60, %v549_v59  ;;  %v738_v59 = vld [vmem:[#allocation14 + $0x58] sm:$0xff] }
  0xe3   :  { %1516 = vmatpush3.bf16.msra.mxu0 %v1515_v62  ;;  %v551_v62 = vld [vmem:[#allocation11 + $0x50] sm:$0xff] }
  0xe4   :  { %1517 = vmatprep.subr.bf16.mxu0 %v2080_v0  ;;  %v1569_v2 = vpack.c.bf16 %v552_v63, %v551_v62  ;;  %v740_v62 = vld [vmem:[#allocation14 + $0x68] sm:$0xff] }
  0xe7   :  { %1519 = vmatpush3.bf16.msra.mxu0 %v1518_v3  ;;  %v553_v3 = vld [vmem:[#allocation11 + $0x60] sm:$0xff] }
  0xe8   :  { %1520 = vmatprep.subr.bf16.mxu0 %v2080_v0  ;;  %v1572_v5 = vpack.c.bf16 %v554_v4, %v553_v3 }
  0xeb   :  { %1522 = vmatpush3.bf16.msra.mxu0 %v1521_v6  ;;  %v1034_v6 = vld [vmem:[%s2522_s9 + $0x2] ss:$0 sm:$0xff] }
  0xec   :  { %1523 = vmatprep.subr.bf16.mxu0 %v2080_v0 }
  0xef   :  { %1525 = vmatpush3.bf16.msra.mxu0 %v1524_v9 }
  0xf0   :  { %1526 = vmatprep.subr.bf16.mxu0 %v2080_v0 }
  0xf3   :  { %1528 = vmatpush3.bf16.msra.mxu0 %v1527_v17 }
  0xf4   :  { %1553 = vmatprep.subr.bf16.mxu0 %v2080_v0 }
 0x1a9   :  { %v256_v11 = vpop.f32.mrb[0].mxu0 }
 0x1aa   :  { %v257_v12 = vadd.f32 %v1032_v10, %v256_v11  ;;  %v1211_v13 = vpop.f32.mrb[1].mxu0  ;;  %v555_v11 = vld [vmem:[#allocation11 + $0x70] sm:$0xff] }
 0x1ac   :  { %v260_v14 = vmax.f32 %v257_v12, 0.0  ;;  %v556_v12 = vld [vmem:[#allocation11 + $0x78] sm:$0xff] }
 0x1ad   :  { %v1575_v13 = vpack.c.bf16 %v556_v12, %v555_v11  ;;  %v821_v11 = vld [vmem:[#allocation16 + $0x8] sm:$0xff]  ;;  %v822_v12 = vld [vmem:[#allocation16 + $0x10] sm:$0xff] }
 0x1ae   :  { %261 = vst [vmem:[#allocation17] sm:$0xff] %v260_v14  ;;  %1245 = vmatmul.mubr.f32.vlgmr.msra.gmra.mrb[0].mxu1 %v260_v14  ;;  %v634_v14 = vld [vmem:[#allocation13] sm:$0xff] }
 0x1af   :  { %1314 = vmatprep.mubr.msk.f32.mxu1 %vm2081_vm0, %v2082_v1  ;;  %1531 = vmatpush3.bf16.msra.mxu1 %v1530_v21  ;;  %v1578_v17 = vpack.c.bf16 %v635_v15, %v634_v14  ;;  %v639_v21 = vld [vmem:[#allocation13 + $0x28] sm:$0xff]  ;;  %v823_v14 = vld [vmem:[#allocation16 + $0x18] sm:$0xff] }
 0x1b0   :  { %1532 = vmatprep.subr.bf16.mxu1 %v2080_v0  ;;  %v1584_v22 = vpack.c.bf16 %v639_v21, %v638_v20  ;;  %v1629_v15 = vpack.c.bf16 %v823_v14, %v822_v12  ;;  %v828_v21 = vld [vmem:[#allocation16 + $0x40] sm:$0xff] }
 0x1b3   :  { %1534 = vmatpush3.bf16.msra.mxu1 %v1533_v23  ;;  %v640_v23 = vld [vmem:[#allocation13 + $0x30] sm:$0xff] }
 0x1b4   :  { %1535 = vmatprep.subr.bf16.mxu1 %v2080_v0  ;;  %v1587_v25 = vpack.c.bf16 %v641_v24, %v640_v23  ;;  %v830_v24 = vld [vmem:[#allocation16 + $0x50] sm:$0xff] }
 0x1b7   :  { %1537 = vmatpush3.bf16.msra.mxu1 %v1536_v26  ;;  %v642_v26 = vld [vmem:[#allocation13 + $0x40] sm:$0xff] }
 0x1b8   :  { %1538 = vmatprep.subr.bf16.mxu1 %v2080_v0  ;;  %v1590_v28 = vpack.c.bf16 %v643_v27, %v642_v26  ;;  %v832_v27 = vld [vmem:[#allocation16 + $0x60] sm:$0xff] }
 0x1bb   :  { %1540 = vmatpush3.bf16.msra.mxu1 %v1539_v29  ;;  %v644_v29 = vld [vmem:[#allocation13 + $0x50] sm:$0xff] }
 0x1bc   :  { %1541 = vmatprep.subr.bf16.mxu1 %v2080_v0  ;;  %v1593_v31 = vpack.c.bf16 %v645_v30, %v644_v29  ;;  %v1037_v30 = vld [vmem:[%s2522_s9 + $0x5] ss:$0 sm:$0xff] }
 0x1bf   :  { %1543 = vmatpush3.bf16.msra.mxu1 %v1542_v32  ;;  %v646_v32 = vld [vmem:[#allocation13 + $0x60] sm:$0xff] }
 0x1c0   :  { %1544 = vmatprep.subr.bf16.mxu1 %v2080_v0  ;;  %v1596_v34 = vpack.c.bf16 %v647_v33, %v646_v32 }
 0x1c3   :  { %1546 = vmatpush3.bf16.msra.mxu1 %v1545_v35  ;;  %v1035_v35 = vld [vmem:[%s2522_s9 + $0x3] ss:$0 sm:$0xff] }
 0x1c4   :  { %1547 = vmatprep.subr.bf16.mxu1 %v2080_v0 }
 0x1c7   :  { %1549 = vmatpush3.bf16.msra.mxu1 %v1548_v38 }
 0x1c8   :  { %1550 = vmatprep.subr.bf16.mxu1 %v2080_v0 }
 0x1cb   :  { %1552 = vmatpush3.bf16.msra.mxu1 %v1551_v46 }
 0x1cc   :  { %1577 = vmatprep.subr.bf16.mxu1 %v2080_v0 }
 0x281   :  { %v349_v40 = vpop.f32.mrb[0].mxu1 }
 0x282   :  { %v350_v41 = vadd.f32 %v1033_v39, %v349_v40  ;;  %v1246_v42 = vpop.f32.mrb[1].mxu1  ;;  %v648_v40 = vld [vmem:[#allocation13 + $0x70] sm:$0xff] }
 0x284   :  { %v353_v43 = vmax.f32 %v350_v41, 0.0  ;;  %v649_v41 = vld [vmem:[#allocation13 + $0x78] sm:$0xff] }
 0x285   :  { %v1599_v42 = vpack.c.bf16 %v649_v41, %v648_v40 }
 0x286   :  { %354 = vst [vmem:[#allocation18] sm:$0xff] %v353_v43  ;;  %1280 = vmatmul.mubr.f32.vlgmr.msra.gmra.mrb[2].mxu0 %v353_v43  ;;  %v727_v43 = vld [vmem:[#allocation14] sm:$0xff] }
 0x287   :  { %1349 = vmatprep.mubr.msk.f32.mxu0 %vm2081_vm0, %v2082_v1  ;;  %1555 = vmatpush3.bf16.msra.mxu0 %v1554_v50  ;;  %v1602_v46 = vpack.c.bf16 %v728_v44, %v727_v43  ;;  %v732_v50 = vld [vmem:[#allocation14 + $0x28] sm:$0xff] }
 0x288   :  { %1556 = vmatprep.subr.bf16.mxu0 %v2080_v0  ;;  %v1608_v51 = vpack.c.bf16 %v732_v50, %v731_v49 }
 0x28b   :  { %1558 = vmatpush3.bf16.msra.mxu0 %v1557_v52  ;;  %v733_v52 = vld [vmem:[#allocation14 + $0x30] sm:$0xff] }
 0x28c   :  { %1559 = vmatprep.subr.bf16.mxu0 %v2080_v0  ;;  %v1611_v54 = vpack.c.bf16 %v734_v53, %v733_v52 }
 0x28f   :  { %1561 = vmatpush3.bf16.msra.mxu0 %v1560_v55  ;;  %v735_v55 = vld [vmem:[#allocation14 + $0x40] sm:$0xff] }
 0x290   :  { %1562 = vmatprep.subr.bf16.mxu0 %v2080_v0  ;;  %v1614_v57 = vpack.c.bf16 %v736_v56, %v735_v55 }
 0x293   :  { %1564 = vmatpush3.bf16.msra.mxu0 %v1563_v58  ;;  %v737_v58 = vld [vmem:[#allocation14 + $0x50] sm:$0xff] }
 0x294   :  { %1565 = vmatprep.subr.bf16.mxu0 %v2080_v0  ;;  %v1617_v60 = vpack.c.bf16 %v738_v59, %v737_v58 }
 0x297   :  { %1567 = vmatpush3.bf16.msra.mxu0 %v1566_v61  ;;  %v739_v61 = vld [vmem:[#allocation14 + $0x60] sm:$0xff] }
 0x298   :  { %1568 = vmatprep.subr.bf16.mxu0 %v2080_v0  ;;  %v1620_v63 = vpack.c.bf16 %v740_v62, %v739_v61 }
 0x29b   :  { %1570 = vmatpush3.bf16.msra.mxu0 %v1569_v2  ;;  %v1036_v2 = vld [vmem:[%s2522_s9 + $0x4] ss:$0 sm:$0xff] }
 0x29c   :  { %1571 = vmatprep.subr.bf16.mxu0 %v2080_v0 }
 0x29f   :  { %1573 = vmatpush3.bf16.msra.mxu0 %v1572_v5 }
 0x2a0   :  { %1574 = vmatprep.subr.bf16.mxu0 %v2080_v0 }
 0x2a3   :  { %1576 = vmatpush3.bf16.msra.mxu0 %v1575_v13 }
 0x2a4   :  { %1601 = vmatprep.subr.bf16.mxu0 %v2080_v0 }
 0x359   :  { %v442_v7 = vpop.f32.mrb[2].mxu0 }
 0x35a   :  { %v443_v8 = vadd.f32 %v1034_v6, %v442_v7  ;;  %v1281_v9 = vpop.f32.mrb[3].mxu0  ;;  %v741_v7 = vld [vmem:[#allocation14 + $0x70] sm:$0xff] }
 0x35c   :  { %v446_v10 = vmax.f32 %v443_v8, 0.0  ;;  %v742_v8 = vld [vmem:[#allocation14 + $0x78] sm:$0xff] }
 0x35d   :  { %v1623_v9 = vpack.c.bf16 %v742_v8, %v741_v7 }
 0x35e   :  { %447 = vst [vmem:[#allocation20] sm:$0xff] %v446_v10  ;;  %1315 = vmatmul.mubr.f32.vlgmr.msra.gmra.mrb[2].mxu1 %v446_v10  ;;  %v820_v10 = vld [vmem:[#allocation16] sm:$0xff] }
 0x35f   :  { %1384 = vmatprep.mubr.msk.f32.mxu1 %vm2081_vm0, %v2082_v1  ;;  %1579 = vmatpush3.bf16.msra.mxu1 %v1578_v17  ;;  %v1626_v13 = vpack.c.bf16 %v821_v11, %v820_v10  ;;  %v825_v17 = vld [vmem:[#allocation16 + $0x28] sm:$0xff] }
 0x360   :  { %1580 = vmatprep.subr.bf16.mxu1 %v2080_v0  ;;  %v1632_v18 = vpack.c.bf16 %v825_v17, %v824_v16 }
 0x363   :  { %1582 = vmatpush3.bf16.msra.mxu1 %v1581_v19  ;;  %v827_v19 = vld [vmem:[#allocation16 + $0x38] sm:$0xff] }
 0x364   :  { %1583 = vmatprep.subr.bf16.mxu1 %v2080_v0 }
 0x367   :  { %1585 = vmatpush3.bf16.msra.mxu1 %v1584_v22  ;;  %v829_v22 = vld [vmem:[#allocation16 + $0x48] sm:$0xff] }
 0x368   :  { %1586 = vmatprep.subr.bf16.mxu1 %v2080_v0  ;;  %v1638_v23 = vpack.c.bf16 %v829_v22, %v828_v21 }
 0x36b   :  { %1588 = vmatpush3.bf16.msra.mxu1 %v1587_v25  ;;  %v831_v25 = vld [vmem:[#allocation16 + $0x58] sm:$0xff] }
 0x36c   :  { %1589 = vmatprep.subr.bf16.mxu1 %v2080_v0  ;;  %v1641_v26 = vpack.c.bf16 %v831_v25, %v830_v24 }
 0x36f   :  { %1591 = vmatpush3.bf16.msra.mxu1 %v1590_v28  ;;  %v833_v28 = vld [vmem:[#allocation16 + $0x68] sm:$0xff] }
 0x370   :  { %1592 = vmatprep.subr.bf16.mxu1 %v2080_v0  ;;  %v1644_v29 = vpack.c.bf16 %v833_v28, %v832_v27 }
 0x373   :  { %1594 = vmatpush3.bf16.msra.mxu1 %v1593_v31 }
 0x374   :  { %1595 = vmatprep.subr.bf16.mxu1 %v2080_v0 }
 0x377   :  { %1597 = vmatpush3.bf16.msra.mxu1 %v1596_v34 }
 0x378   :  { %1598 = vmatprep.subr.bf16.mxu1 %v2080_v0 }
 0x37b   :  { %1600 = vmatpush3.bf16.msra.mxu1 %v1599_v42 }
 0x37c   :  { %1625 = vmatprep.subr.bf16.mxu1 %v2080_v0 }
 0x431   :  { %v535_v36 = vpop.f32.mrb[2].mxu1 }
 0x432   :  { %v536_v37 = vadd.f32 %v1035_v35, %v535_v36  ;;  %v1316_v38 = vpop.f32.mrb[3].mxu1  ;;  %v834_v35 = vld [vmem:[#allocation16 + $0x70] sm:$0xff]  ;;  %v835_v36 = vld [vmem:[#allocation16 + $0x78] sm:$0xff] }
 0x433   :  { %v1038_v38 = vld [vmem:[%s2522_s9 + $0x6] ss:$0 sm:$0xff] }
 0x434   :  { %v539_v39 = vmax.f32 %v536_v37, 0.0  ;;  %v1647_v37 = vpack.c.bf16 %v835_v36, %v834_v35 }
 0x436   :  { %540 = vst [vmem:[#allocation21] sm:$0xff] %v539_v39  ;;  %1350 = vmatmul.mubr.f32.vlgmr.msra.gmra.mrb[4].mxu0 %v539_v39 }
 0x437   :  { %1419 = vmatprep.mubr.msk.f32.mxu0 %vm2081_vm0, %v2082_v1  ;;  %1603 = vmatpush3.bf16.msra.mxu0 %v1602_v46 }
 0x438   :  { %1604 = vmatprep.subr.bf16.mxu0 %v2080_v0 }
 0x43b   :  { %1606 = vmatpush3.bf16.msra.mxu0 %v1605_v48 }
 0x43c   :  { %1607 = vmatprep.subr.bf16.mxu0 %v2080_v0 }
 0x43f   :  { %1609 = vmatpush3.bf16.msra.mxu0 %v1608_v51 }
 0x440   :  { %1610 = vmatprep.subr.bf16.mxu0 %v2080_v0 }
 0x443   :  { %1612 = vmatpush3.bf16.msra.mxu0 %v1611_v54 }
 0x444   :  { %1613 = vmatprep.subr.bf16.mxu0 %v2080_v0 }
 0x447   :  { %1615 = vmatpush3.bf16.msra.mxu0 %v1614_v57 }
 0x448   :  { %1616 = vmatprep.subr.bf16.mxu0 %v2080_v0 }
 0x44b   :  { %1618 = vmatpush3.bf16.msra.mxu0 %v1617_v60 }
 0x44c   :  { %1619 = vmatprep.subr.bf16.mxu0 %v2080_v0 }
 0x44f   :  { %1621 = vmatpush3.bf16.msra.mxu0 %v1620_v63 }
 0x450   :  { %1622 = vmatprep.subr.bf16.mxu0 %v2080_v0 }
 0x453   :  { %1624 = vmatpush3.bf16.msra.mxu0 %v1623_v9 }
 0x509   :  { %v628_v3 = vpop.f32.mrb[4].mxu0 }
 0x50a   :  { %v629_v4 = vadd.f32 %v1036_v2, %v628_v3  ;;  %v1351_v5 = vpop.f32.mrb[5].mxu0 }
 0x50c   :  { %v632_v6 = vmax.f32 %v629_v4, 0.0 }
 0x50e   :  { %633 = vst [vmem:[#allocation23] sm:$0xff] %v632_v6  ;;  %1385 = vmatmul.mubr.f32.vlgmr.msra.gmra.mrb[4].mxu1 %v632_v6 }
 0x50f   :  { %1454 = vmatprep.mubr.msk.f32.mxu1 %vm2081_vm0, %v2082_v1  ;;  %1627 = vmatpush3.bf16.msra.mxu1 %v1626_v13  ;;  %v826_v1 = vld [vmem:[#allocation16 + $0x30] sm:$0xff] }
 0x510   :  { %1628 = vmatprep.subr.bf16.mxu1 %v2080_v0  ;;  %v1635_v20 = vpack.c.bf16 %v827_v19, %v826_v1 }
 0x513   :  { %1630 = vmatpush3.bf16.msra.mxu1 %v1629_v15 }
 0x514   :  { %1631 = vmatprep.subr.bf16.mxu1 %v2080_v0 }
 0x517   :  { %1633 = vmatpush3.bf16.msra.mxu1 %v1632_v18 }
 0x518   :  { %1634 = vmatprep.subr.bf16.mxu1 %v2080_v0 }
 0x51b   :  { %1636 = vmatpush3.bf16.msra.mxu1 %v1635_v20 }
 0x51c   :  { %1637 = vmatprep.subr.bf16.mxu1 %v2080_v0 }
 0x51f   :  { %1639 = vmatpush3.bf16.msra.mxu1 %v1638_v23 }
 0x520   :  { %1640 = vmatprep.subr.bf16.mxu1 %v2080_v0 }
 0x523   :  { %1642 = vmatpush3.bf16.msra.mxu1 %v1641_v26 }
 0x524   :  { %1643 = vmatprep.subr.bf16.mxu1 %v2080_v0 }
 0x527   :  { %1645 = vmatpush3.bf16.msra.mxu1 %v1644_v29 }
 0x528   :  { %1646 = vmatprep.subr.bf16.mxu1 %v2080_v0 }
 0x52b   :  { %1648 = vmatpush3.bf16.msra.mxu1 %v1647_v37 }
 0x5e1   :  { %v721_v31 = vpop.f32.mrb[4].mxu1 }
 0x5e2   :  { %v722_v32 = vadd.f32 %v1037_v30, %v721_v31  ;;  %v1386_v33 = vpop.f32.mrb[5].mxu1 }
 0x5e4   :  { %v725_v34 = vmax.f32 %v722_v32, 0.0 }
 0x5e6   :  { %726 = vst [vmem:[#allocation24] sm:$0xff] %v725_v34  ;;  %1420 = vmatmul.mubr.f32.vlgmr.msra.gmra.mrb[6].mxu0 %v725_v34 }
 0x6b9   :  { %v814_v39 = vpop.f32.mrb[6].mxu0 }
 0x6ba   :  { %v815_v0 = vadd.f32 %v1038_v38, %v814_v39  ;;  %v1421_v40 = vpop.f32.mrb[7].mxu0 }
 0x6bc   :  { %v818_v41 = vmax.f32 %v815_v0, 0.0 }
 0x6be   :  { %819 = vst [vmem:[#allocation26] sm:$0xff] %v818_v41  ;;  %1455 = vmatmul.mubr.f32.vlgmr.msra.gmra.mrb[6].mxu1 %v818_v41 }
 0x6bf   :  { %1884 = shalt.err (!%p1881_p6)
}
 0x6c0   :  { %s1885_s19 = scalar_lea.hbm %s2524_s11, 128 }
 0x6c1   :  { %p1886_p7 = scmp.ne.s32.totalorder %s2524_s11, %s1885_s19  ;;  %p1889_p8 = scmp.lt.u32.totalorder %s1885_s19, %s2524_s11 }
 0x6c3   :  { %p1891_p9 = pnand %p1889_p8, %p1886_p7 }
 0x6c5   :  { %1894 = shalt.err (!%p1891_p9)
}
 0x6c6   :  { %937 = dma.vmem_to_hbm [thread:$0]  %s935_s0, 128, %s2524_s11, [#allocation19]  }
 0x6c7   :  { %s1895_s22 = scalar_lea.vmem %s955_s30, 128  ;;  %p1900_p11 = scmp.lt.s32.totalorder %s955_s30, %s955_s30 }
 0x6c8   :  { %p1896_p10 = scmp.ne.s32.totalorder %s955_s30, %s1895_s22  ;;  %p1901_p12 = scmp.lt.s32.totalorder %s1895_s22, %s1895_s22 }
 0x6ca   :  { %p1902_p13 = por %p1901_p12, %p1900_p11 }
 0x6cc   :  { %p1903_p0 = pnand %p1902_p13, %p1896_p10 }
 0x6ce   :  { %1906 = shalt.err (!%p1903_p0)
}
 0x6cf   :  { %s1907_s23 = scalar_lea.hbm %s2526_s13, 128 }
 0x6d0   :  { %p1908_p1 = scmp.ne.s32.totalorder %s2526_s13, %s1907_s23  ;;  %p1911_p2 = scmp.lt.u32.totalorder %s1907_s23, %s2526_s13 }
 0x6d2   :  { %p1913_p3 = pnand %p1911_p2, %p1908_p1 }
 0x6d4   :  { %1916 = shalt.err (!%p1913_p3)
}
 0x6d5   :  { %957 = dma.vmem_to_hbm [thread:$0]  %s955_s30, 128, %s2526_s13, [#allocation22]  }
 0x6d6   :  { %s2085_s1 = smov [#allocation24]   ;;  %s2086_s0 = smov [#allocation17]  }
 0x6d7   :  { %s974_s24 = sshll.u32 %s2085_s1, 4  ;;  %s924_s29 = sshll.u32 %s2086_s0, 4  ;;  %s975_s24 = int_to_ptr.vmem [resolvable:$true] %s974_s24  ;;  %s925_s29 = int_to_ptr.vmem [resolvable:$true] %s924_s29 }
 0x6d8   :  { %s1917_s2 = scalar_lea.vmem %s975_s24, 128  ;;  %p1922_p5 = scmp.lt.s32.totalorder %s975_s24, %s975_s24 }
 0x6d9   :  { %p1918_p4 = scmp.ne.s32.totalorder %s975_s24, %s1917_s2  ;;  %p1923_p6 = scmp.lt.s32.totalorder %s1917_s2, %s1917_s2 }
 0x6db   :  { %p1924_p7 = por %p1923_p6, %p1922_p5 }
 0x6dd   :  { %p1925_p8 = pnand %p1924_p7, %p1918_p4 }
 0x6df   :  { %1928 = shalt.err (!%p1925_p8)
}
 0x6e0   :  { %s1929_s19 = scalar_lea.hbm %s2528_s15, 128 }
 0x6e1   :  { %p1930_p9 = scmp.ne.s32.totalorder %s2528_s15, %s1929_s19  ;;  %p1933_p10 = scmp.lt.u32.totalorder %s1929_s19, %s2528_s15 }
 0x6e3   :  { %p1935_p11 = pnand %p1933_p10, %p1930_p9 }
 0x6e5   :  { %1938 = shalt.err (!%p1935_p11)
}
 0x6e6   :  { %977 = dma.vmem_to_hbm [thread:$0]  %s975_s24, 128, %s2528_s15, [#allocation25]  }
 0x6e7   :  { %s1939_s21 = scalar_lea.vmem %s925_s29, 128  ;;  %p1944_p13 = scmp.lt.s32.totalorder %s925_s29, %s925_s29 }
 0x6e8   :  { %p1940_p12 = scmp.ne.s32.totalorder %s925_s29, %s1939_s21  ;;  %p1945_p0 = scmp.lt.s32.totalorder %s1939_s21, %s1939_s21 }
 0x6ea   :  { %p1946_p1 = por %p1945_p0, %p1944_p13 }
 0x6ec   :  { %p1947_p2 = pnand %p1946_p1, %p1940_p12 }
 0x6ee   :  { %1950 = shalt.err (!%p1947_p2)
}
 0x6ef   :  { %s1951_s28 = scalar_lea.hbm %s2523_s10, 128 }
 0x6f0   :  { %p1952_p3 = scmp.ne.s32.totalorder %s2523_s10, %s1951_s28  ;;  %p1955_p4 = scmp.lt.u32.totalorder %s1951_s28, %s2523_s10 }
 0x6f2   :  { %p1957_p5 = pnand %p1955_p4, %p1952_p3 }
 0x6f4   :  { %1960 = shalt.err (!%p1957_p5)
}
 0x6f5   :  { %927 = dma.vmem_to_hbm [thread:$0]  %s925_s29, 128, %s2523_s10, [#allocation4]  }
 0x6f6   :  { %s2087_s4 = smov [#allocation20]   ;;  %s2088_s5 = smov [#allocation23]  }
 0x6f7   :  { %s944_s11 = sshll.u32 %s2087_s4, 4  ;;  %s964_s1 = sshll.u32 %s2088_s5, 4  ;;  %s945_s11 = int_to_ptr.vmem [resolvable:$true] %s944_s11  ;;  %s965_s1 = int_to_ptr.vmem [resolvable:$true] %s964_s1 }
 0x6f8   :  { %s1961_s24 = scalar_lea.vmem %s945_s11, 128  ;;  %p1966_p7 = scmp.lt.s32.totalorder %s945_s11, %s945_s11 }
 0x6f9   :  { %p1962_p6 = scmp.ne.s32.totalorder %s945_s11, %s1961_s24  ;;  %p1967_p8 = scmp.lt.s32.totalorder %s1961_s24, %s1961_s24 }
 0x6fb   :  { %p1968_p9 = por %p1967_p8, %p1966_p7 }
 0x6fd   :  { %p1969_p10 = pnand %p1968_p9, %p1962_p6 }
 0x6ff   :  { %1972 = shalt.err (!%p1969_p10)
}
 0x700   :  { %s1973_s27 = scalar_lea.hbm %s2525_s12, 128 }
 0x701   :  { %p1974_p11 = scmp.ne.s32.totalorder %s2525_s12, %s1973_s27  ;;  %p1977_p12 = scmp.lt.u32.totalorder %s1973_s27, %s2525_s12 }
 0x703   :  { %p1979_p13 = pnand %p1977_p12, %p1974_p11 }
 0x705   :  { %1982 = shalt.err (!%p1979_p13)
}
 0x706   :  { %947 = dma.vmem_to_hbm [thread:$0]  %s945_s11, 128, %s2525_s12, [#allocation19]  }
 0x707   :  { %s1983_s13 = scalar_lea.vmem %s965_s1, 128  ;;  %p1988_p1 = scmp.lt.s32.totalorder %s965_s1, %s965_s1 }
 0x708   :  { %p1984_p0 = scmp.ne.s32.totalorder %s965_s1, %s1983_s13  ;;  %p1989_p2 = scmp.lt.s32.totalorder %s1983_s13, %s1983_s13 }
 0x70a   :  { %p1990_p3 = por %p1989_p2, %p1988_p1 }
 0x70c   :  { %p1991_p4 = pnand %p1990_p3, %p1984_p0 }
 0x70e   :  { %1994 = shalt.err (!%p1991_p4)
}
 0x70f   :  { %s1995_s20 = scalar_lea.hbm %s2527_s14, 128 }
 0x710   :  { %p1996_p5 = scmp.ne.s32.totalorder %s2527_s14, %s1995_s20  ;;  %p1999_p6 = scmp.lt.u32.totalorder %s1995_s20, %s2527_s14 }
 0x712   :  { %p2001_p7 = pnand %p1999_p6, %p1996_p5 }
 0x714   :  { %2004 = shalt.err (!%p2001_p7)
}
 0x715   :  { %967 = dma.vmem_to_hbm [thread:$0]  %s965_s1, 128, %s2527_s14, [#allocation22]  }
 0x716   :  { %s2089_s23 = smov [#allocation26]  }
 0x717   :  { %s984_s16 = sshll.u32 %s2089_s23, 4  ;;  %s985_s16 = int_to_ptr.vmem [resolvable:$true] %s984_s16 }
 0x718   :  { %s2005_s17 = scalar_lea.vmem %s985_s16, 128  ;;  %p2010_p9 = scmp.lt.s32.totalorder %s985_s16, %s985_s16 }
 0x719   :  { %p2006_p8 = scmp.ne.s32.totalorder %s985_s16, %s2005_s17  ;;  %p2011_p10 = scmp.lt.s32.totalorder %s2005_s17, %s2005_s17 }
 0x71b   :  { %p2012_p11 = por %p2011_p10, %p2010_p9 }
 0x71d   :  { %p2013_p12 = pnand %p2012_p11, %p2006_p8 }
 0x71f   :  { %2016 = shalt.err (!%p2013_p12)
}
 0x720   :  { %s2541_s4 = sld [smem:[#allocation41_spill]] }
 0x726   :  { %s2017_s11 = scalar_lea.hbm %s2541_s4, 128 }
 0x727   :  { %p2018_p13 = scmp.ne.s32.totalorder %s2541_s4, %s2017_s11  ;;  %p2021_p0 = scmp.lt.u32.totalorder %s2017_s11, %s2541_s4 }
 0x729   :  { %p2023_p1 = pnand %p2021_p0, %p2018_p13 }
 0x72b   :  { %2026 = shalt.err (!%p2023_p1)
}
 0x72c   :  { %987 = dma.vmem_to_hbm [thread:$0]  %s985_s16, 128, %s2541_s4, [#allocation25]   ;;  %v1039_v42 = vld [vmem:[%s2522_s9 + $0x7] ss:$0 sm:$0xff] }
 0x72d   :  { %s2090_s19 = smov [#allocation27]  }
 0x72e   :  { %s994_s10 = sshll.u32 %s2090_s19, 4  ;;  %s995_s10 = int_to_ptr.vmem [resolvable:$true] %s994_s10 }
 0x72f   :  { %s2027_s29 = scalar_lea.vmem %s995_s10, 128  ;;  %p2032_p3 = scmp.lt.s32.totalorder %s995_s10, %s995_s10 }
 0x730   :  { %p2028_p2 = scmp.ne.s32.totalorder %s995_s10, %s2027_s29  ;;  %p2033_p4 = scmp.lt.s32.totalorder %s2027_s29, %s2027_s29 }
 0x732   :  { %p2034_p5 = por %p2033_p4, %p2032_p3 }
 0x734   :  { %p2035_p6 = pnand %p2034_p5, %p2028_p2 }
 0x791   :  { %v907_v43 = vpop.f32.mrb[6].mxu1 }
 0x792   :  { %v908_v44 = vadd.f32 %v1039_v42, %v907_v43  ;;  %v1456_v45 = vpop.f32.mrb[7].mxu1 }
 0x794   :  { %v1040_v46 = vmul.f32 -1.442695, %v908_v44 }
 0x796   :  { %1671 = vpow2.f32 %v1040_v46 }
 0x7a0   :  { %v1672_v47 = vpop.eup %1671 }
 0x7a1   :  { %v914_v48 = vadd.f32 1.0, %v1672_v47 }
 0x7a3   :  { %1673 = vrcp.f32 %v914_v48 }
 0x7ad   :  { %v1674_v49 = vpop.eup %1673 }
 0x7ae   :  { %917 = vst [vmem:[#allocation27] sm:$0xff] %v1674_v49 }
 0x7af   :  { %2038 = shalt.err (!%p2035_p6)
}
 0x7b0   :  { %s2542_s3 = sld [smem:[#allocation42_spill]] }
 0x7b6   :  { %s2039_s13 = scalar_lea.hbm %s2542_s3, 128 }
 0x7b7   :  { %p2040_p7 = scmp.ne.s32.totalorder %s2542_s3, %s2039_s13  ;;  %p2043_p8 = scmp.lt.u32.totalorder %s2039_s13, %s2542_s3 }
 0x7b9   :  { %p2045_p9 = pnand %p2043_p8, %p2040_p7 }
 0x7bb   :  { %2048 = shalt.err (!%p2045_p9)
}
 0x7bc   :  { %997 = dma.vmem_to_hbm [thread:$0]  %s995_s10, 128, %s2542_s3, [#allocation28]  }
 0x7bd   :  { %2059 = dma.done.wait [#allocation4], 128  }
 0x7be   :  { %2060 = vsyncadd [#allocation4], 4294967168 }
 0x7bf   :  { %2061 = dma.done.wait [#allocation19], 256  }
 0x7c0   :  { %2062 = vsyncadd [#allocation19], 4294967040 }
 0x7c1   :  { %2063 = dma.done.wait [#allocation22], 256  }
 0x7c2   :  { %2064 = vsyncadd [#allocation22], 4294967040 }
 0x7c3   :  { %2065 = dma.done.wait [#allocation25], 256  }
 0x7c4   :  { %2066 = vsyncadd [#allocation25], 4294967040 }
 0x7c5   :  { %2067 = dma.done.wait [#allocation28], 128  }
 0x7c6   :  { %2068 = vsyncadd [#allocation28], 4294967168 }
 0x7c7   :  { %1022 = vsyncpa [#allocation3], 1 }
 0x7c8   :  { %1023 = vsyncpa [#allocation6], 1 }
 0x7c9   :  { %1024 = vsyncpa [#allocation9], 1 }
 0x7ca   :  { %1025 = vsyncpa [#allocation12], 1 }
 0x7cb   :  { %1026 = vsyncpa [#allocation15], 1 }
 0x7cc   :  { %1027 = vsyncpa [#allocation4], 1 }
 0x7cd   :  { %1028 = vsyncpa [#allocation19], 1 }
 0x7ce   :  { %1029 = vsyncpa [#allocation22], 1 }
 0x7cf   :  { %1030 = vsyncpa [#allocation25], 1 }
 0x7d0   :  { %1031 = vsyncpa [#allocation28], 1 }

</bundles_post_ra>
